<compile_context>
chip_gen: v6e
topology: v6e:2x2x1
jax: 0.10.0
libtpu: 0.0.40
codegen_flags: <defaults>
</compile_context>

<pallas_src>
import functools

import jax
import jax.numpy as jnp
from jax import lax
from jax.experimental import pallas as pl
from jax.experimental.pallas import tpu as pltpu


# ---------------------------------------------------------------------------
# Merged modality kernel: GraphPooling + Mix + node-mean for a (Bc, N, D) batch
# block of ONE modality per grid step.  Grid = (modality, batch_block).
# ---------------------------------------------------------------------------
def _modality_kernel(x_ref, wq_ref, wk_ref, wv_ref, wo_ref,
                     w1_ref, b1_ref, w2_ref, b2_ref, out_ref, *, knn_k):
    x = x_ref[0].astype(jnp.float32)            # (Bc, N, D)
    Bc, N, D = x.shape

    # ---- GraphPooling: kNN adjacency from pairwise squared distances (f32) --
    gram = jnp.einsum('bnd,bmd->bnm', x, x,
                      preferred_element_type=jnp.float32)          # (Bc, N, N)
    sq = jnp.sum(x * x, axis=-1)                                   # (Bc, N)
    dist = sq[:, :, None] + sq[:, None, :] - 2.0 * gram
    col_ids = lax.broadcasted_iota(jnp.int32, (Bc, N, N), 2)
    row_ids = lax.broadcasted_iota(jnp.int32, (Bc, N, N), 1)
    big = jnp.float32(1e30)
    dist = jnp.where(row_ids == col_ids, big, dist)                # exclude self

    adj = jnp.zeros((Bc, N, N), jnp.float32)
    for _ in range(knn_k):                      # k is small & static (unrolled)
        minv = jnp.min(dist, axis=-1, keepdims=True)
        # first (lowest-index) minimum -> one-hot neighbor selection
        sel = jnp.min(jnp.where(dist <= minv, col_ids, N),
                      axis=-1, keepdims=True)
        onehot = col_ids == sel
        adj = adj + onehot.astype(jnp.float32)
        dist = jnp.where(onehot, big, dist)

    x_pool = jnp.einsum('bnm,bmd->bnd', adj, x,
                        preferred_element_type=jnp.float32) * (1.0 / knn_k)

    # ---- Shared-weight projections on flattened (Bc*N, D) rows (bf16 MXU) ---
    bf = jnp.bfloat16
    x_rows = x.reshape(Bc * N, D).astype(bf)
    xp_rows = x_pool.reshape(Bc * N, D).astype(bf)
    q = jnp.dot(xp_rows, wq_ref[0].astype(bf),
                preferred_element_type=jnp.float32).reshape(Bc, N, D)
    k = jnp.dot(x_rows, wk_ref[0].astype(bf),
                preferred_element_type=jnp.float32).reshape(Bc, N, D)
    v = jnp.dot(x_rows, wv_ref[0].astype(bf),
                preferred_element_type=jnp.float32).reshape(Bc, N, D)

    # ---- Mix: single-head cross attention (Q from pooled, K/V from nodes) ---
    scores = jnp.einsum('bqd,bkd->bqk', q, k,
                        preferred_element_type=jnp.float32)
    scores = scores * (1.0 / jnp.sqrt(jnp.float32(D)))
    scores = scores - jnp.max(scores, axis=-1, keepdims=True)
    p = jnp.exp(scores)
    attn = p * pl.reciprocal(jnp.sum(p, axis=-1, keepdims=True), approx=True)
    ctx = jnp.einsum('bqk,bkd->bqd', attn.astype(bf), v.astype(bf),
                     preferred_element_type=jnp.float32)
    attn_out = jnp.dot(ctx.reshape(Bc * N, D).astype(bf), wo_ref[0].astype(bf),
                       preferred_element_type=jnp.float32).reshape(Bc, N, D)
    h = x_pool + attn_out

    # ---- Mix MLP (d_hidden = d_model) + residual, flattened rows ------------
    h_rows = h.reshape(Bc * N, D)
    h1 = jnp.maximum(jnp.dot(h_rows.astype(bf), w1_ref[0].astype(bf),
                             preferred_element_type=jnp.float32) + b1_ref[0],
                     0.0)
    h2 = jnp.dot(h1.astype(bf), w2_ref[0].astype(bf),
                 preferred_element_type=jnp.float32) + b2_ref[0]
    nodes_out = h + h2.reshape(Bc, N, D)

    # ---- per-sample mean over nodes (== t.mean(dim=0) in PyTorch) -----------
    out_ref[0] = jnp.mean(nodes_out, axis=1)                       # (Bc, D)


def run_modalities(x_all, mp, knn_k, block_b=8):
    """x_all: (3, B, N, D) stacked [tab, vis, lan] node sets -> (3, B, D)."""
    M, B, N, D = x_all.shape
    Bc = B if B <= block_b else block_b
    assert B % Bc == 0, "batch must be divisible by the per-step batch block"
    nb = B // Bc

    w_spec = pl.BlockSpec((1, D, D), lambda m, b: (m, 0, 0))
    bias_spec = pl.BlockSpec((1, 1, D), lambda m, b: (m, 0, 0))

    return pl.pallas_call(
        functools.partial(_modality_kernel, knn_k=knn_k),
        out_shape=jax.ShapeDtypeStruct((M, B, D), jnp.float32),
        grid=(M, nb),
        in_specs=[
            pl.BlockSpec((1, Bc, N, D), lambda m, b: (m, b, 0, 0)),
            w_spec, w_spec, w_spec, w_spec,
            w_spec, bias_spec, w_spec, bias_spec,
        ],
        out_specs=pl.BlockSpec((1, Bc, D), lambda m, b: (m, b, 0)),
        compiler_params=pltpu.CompilerParams(
            dimension_semantics=("parallel", "parallel"),
            vmem_limit_bytes=32 * 1024 * 1024),
    )(x_all, mp["wq"], mp["wk"], mp["wv"], mp["wo"],
      mp["w1"], mp["b1"], mp["w2"], mp["b2"])


# ---------------------------------------------------------------------------
# Fusion kernel: gated multimodal fusion + classification head (single call)
# ---------------------------------------------------------------------------
def _fusion_kernel(pooled_ref, wg_ref, bg_ref, wh_ref, bh_ref,
                   wc_ref, bc_ref, out_ref, *, n_mod):
    # gate_input_type='concat': [x_t;x_v;x_l] @ Wg == split-weight sum
    logits = jnp.dot(pooled_ref[0], wg_ref[0],
                     preferred_element_type=jnp.float32)
    for m in range(1, n_mod):
        logits = logits + jnp.dot(pooled_ref[m], wg_ref[m],
                                  preferred_element_type=jnp.float32)
    logits = logits + bg_ref[...]                                   # (B, n_mod)

    # gate_output_type='softmax' over modalities (f32, EUP reciprocal)
    logits = logits - jnp.max(logits, axis=-1, keepdims=True)
    e = jnp.exp(logits)
    z = e * pl.reciprocal(jnp.sum(e, axis=-1, keepdims=True), approx=True)

    fused = None
    for m in range(n_mod):
        h_m = jnp.tanh(jnp.dot(pooled_ref[m], wh_ref[m],
                               preferred_element_type=jnp.float32) + bh_ref[m])
        term = z[:, m:m + 1] * h_m
        fused = term if fused is None else fused + term             # (B, H)

    out_ref[...] = (jnp.dot(fused, wc_ref[...],
                            preferred_element_type=jnp.float32) + bc_ref[...])


def run_fusion(pooled, fp, n_classes):
    M, B, D = pooled.shape
    vmem = lambda: pl.BlockSpec(memory_space=pltpu.MemorySpace.VMEM)
    return pl.pallas_call(
        functools.partial(_fusion_kernel, n_mod=M),
        out_shape=jax.ShapeDtypeStruct((B, n_classes), jnp.float32),
        in_specs=[vmem() for _ in range(7)],
        out_specs=vmem(),
        compiler_params=pltpu.CompilerParams(
            vmem_limit_bytes=32 * 1024 * 1024),
    )(pooled, fp["wg"], fp["bg"], fp["wh"], fp["bh"], fp["wc"], fp["bc"])


# ---------------------------------------------------------------------------
# TopLevelModule wrapper
# ---------------------------------------------------------------------------
def init_params(key, d_model, hidden_size, n_classes, n_mod=3):
    keys = iter(jax.random.split(key, 32))

    def mk(shape, scale):
        return (jax.random.uniform(next(keys), shape, jnp.float32, -1.0, 1.0)
                * scale)

    s = 1.0 / jnp.sqrt(d_model)
    modality = dict(
        wq=mk((n_mod, d_model, d_model), s), wk=mk((n_mod, d_model, d_model), s),
        wv=mk((n_mod, d_model, d_model), s), wo=mk((n_mod, d_model, d_model), s),
        w1=mk((n_mod, d_model, d_model), s), b1=mk((n_mod, 1, d_model), s),
        w2=mk((n_mod, d_model, d_model), s), b2=mk((n_mod, 1, d_model), s),
    )

    sg = 1.0 / jnp.sqrt(n_mod * d_model)
    sh = 1.0 / jnp.sqrt(d_model)
    sc = 1.0 / jnp.sqrt(hidden_size)
    fusion = dict(
        wg=mk((n_mod, d_model, n_mod), sg), bg=mk((1, n_mod), sg),
        wh=mk((n_mod, d_model, hidden_size), sh),
        bh=mk((n_mod, 1, hidden_size), sh),
        wc=mk((hidden_size, n_classes), sc), bc=mk((1, n_classes), sc),
    )
    return dict(modality=modality, fusion=fusion)


def top_level_forward(params, tab_nodes, vis_nodes, lan_nodes,
                      knn_k, n_output_classes):
    x_all = jnp.stack([tab_nodes, vis_nodes, lan_nodes], axis=0)  # (3, B, N, D)
    pooled = run_modalities(x_all, params["modality"], knn_k)     # (3, B, D)
    x = run_fusion(pooled, params["fusion"], n_output_classes)    # (B, C)
    return x if n_output_classes > 1 else x.reshape(-1)


if __name__ == "__main__":
    B, N, D = 2, 8, 32          # batch, nodes per sample, d_model
    HIDDEN = 32
    K = 3
    N_CLASSES = 4

    key = jax.random.PRNGKey(0)
    k_p, k_t, k_v, k_l = jax.random.split(key, 4)
    params = init_params(k_p, D, HIDDEN, N_CLASSES)

    tab_nodes = jax.random.normal(k_t, (B, N, D), jnp.float32)
    vis_nodes = jax.random.normal(k_v, (B, N, D), jnp.float32)
    lan_nodes = jax.random.normal(k_l, (B, N, D), jnp.float32)

    out = top_level_forward(params, tab_nodes, vis_nodes, lan_nodes,
                            knn_k=K, n_output_classes=N_CLASSES)
    out = jax.block_until_ready(out)
    assert out.shape == (B, N_CLASSES)
    print("KERNEL_OK")
</pallas_src>

<mosaic_0001>
module attributes {stable_mosaic.version = 11 : i64} {
  func.func @_modality_kernel(%arg0: i32, %arg1: i32, %arg2: memref<1x2x8x32xf32, #tpu.memory_space<vmem>>, %arg3: memref<1x32x32xf32, #tpu.memory_space<vmem>>, %arg4: memref<1x32x32xf32, #tpu.memory_space<vmem>>, %arg5: memref<1x32x32xf32, #tpu.memory_space<vmem>>, %arg6: memref<1x32x32xf32, #tpu.memory_space<vmem>>, %arg7: memref<1x32x32xf32, #tpu.memory_space<vmem>>, %arg8: memref<1x1x32xf32, #tpu.memory_space<vmem>>, %arg9: memref<1x32x32xf32, #tpu.memory_space<vmem>>, %arg10: memref<1x1x32xf32, #tpu.memory_space<vmem>>, %arg11: memref<1x2x32xf32, #tpu.memory_space<vmem>>) attributes {dimension_semantics = [#tpu.dimension_semantics<parallel>, #tpu.dimension_semantics<parallel>], iteration_bounds = array<i64: 3, 1>, scalar_prefetch = 0 : i64, scratch_operands = 0 : i64, tpu.core_type = #tpu.core_type<tc>, window_params = [{transform_indices = @transform_0, window_bounds = array<i64: 1, 2, 8, 32>}, {transform_indices = @transform_1, window_bounds = array<i64: 1, 32, 32>}, {transform_indices = @transform_2, window_bounds = array<i64: 1, 32, 32>}, {transform_indices = @transform_3, window_bounds = array<i64: 1, 32, 32>}, {transform_indices = @transform_4, window_bounds = array<i64: 1, 32, 32>}, {transform_indices = @transform_5, window_bounds = array<i64: 1, 32, 32>}, {transform_indices = @transform_6, window_bounds = array<i64: 1, 1, 32>}, {transform_indices = @transform_7, window_bounds = array<i64: 1, 32, 32>}, {transform_indices = @transform_8, window_bounds = array<i64: 1, 1, 32>}, {transform_indices = @transform_9, window_bounds = array<i64: 1, 2, 32>}]} {
    %c0 = arith.constant 0 : index
    %c0_0 = arith.constant 0 : index
    %c0_1 = arith.constant 0 : index
    %c0_2 = arith.constant 0 : index
    %0 = vector.load %arg2[%c0, %c0_0, %c0_1, %c0_2] : memref<1x2x8x32xf32, #tpu.memory_space<vmem>>, vector<1x2x8x32xf32>
    %1 = vector.shape_cast %0 : vector<1x2x8x32xf32> to vector<2x8x32xf32>
    "tpu.trace_start"() <{level = 10 : i32, message = "bnd,bmd->bnm"}> : () -> ()
    %cst = arith.constant dense<0.000000e+00> : vector<2x8x8xf32>
    %2 = tpu.matmul %1, %1, %cst {dimension_numbers = #tpu.dot_dimension_numbers<[2], [2], [1], [1], [0, 0, 0, 1, 1, 1], [0], [0]>} : vector<2x8x32xf32>, vector<2x8x32xf32>, vector<2x8x8xf32> -> vector<2x8x8xf32>
    "tpu.trace_stop"() : () -> ()
    %3 = arith.mulf %1, %1 : vector<2x8x32xf32>
    %cst_3 = arith.constant dense<0.000000e+00> : vector<2x8xf32>
    %4 = vector.multi_reduction <add>, %3, %cst_3 [2] : vector<2x8x32xf32> to vector<2x8xf32>
    %5 = vector.shape_cast %4 : vector<2x8xf32> to vector<2x8x1xf32>
    %6 = vector.shape_cast %4 : vector<2x8xf32> to vector<2x1x8xf32>
    %7 = vector.broadcast %5 : vector<2x8x1xf32> to vector<2x8x8xf32>
    %8 = vector.broadcast %6 : vector<2x1x8xf32> to vector<2x8x8xf32>
    %9 = arith.addf %7, %8 : vector<2x8x8xf32>
    %cst_4 = arith.constant 2.000000e+00 : f32
    %10 = vector.broadcast %cst_4 : f32 to vector<2x8x8xf32>
    %11 = arith.mulf %10, %2 : vector<2x8x8xf32>
    %12 = arith.subf %9, %11 : vector<2x8x8xf32>
    %13 = tpu.iota {dimensions = array<i32: 2>} : vector<2x8x8xi32>
    %14 = tpu.iota {dimensions = array<i32: 1>} : vector<2x8x8xi32>
    %15 = arith.cmpi eq, %14, %13 : vector<2x8x8xi32>
    %cst_5 = arith.constant 1.000000e+30 : f32
    %16 = vector.broadcast %cst_5 : f32 to vector<2x8x8xf32>
    %17 = arith.select %15, %16, %12 : vector<2x8x8xi1>, vector<2x8x8xf32>
    %cst_6 = arith.constant 0.000000e+00 : f32
    %18 = vector.broadcast %cst_6 : f32 to vector<2x8x8xf32>
    %cst_7 = arith.constant dense<0x7F800000> : vector<2x8xf32>
    %19 = vector.multi_reduction <minimumf>, %17, %cst_7 [2] : vector<2x8x8xf32> to vector<2x8xf32>
    %20 = vector.shape_cast %19 : vector<2x8xf32> to vector<2x8x1xf32>
    %21 = vector.broadcast %20 : vector<2x8x1xf32> to vector<2x8x8xf32>
    %22 = arith.cmpf ole, %17, %21 : vector<2x8x8xf32>
    %c8_i32 = arith.constant 8 : i32
    %23 = vector.broadcast %c8_i32 : i32 to vector<2x8x8xi32>
    %24 = arith.select %22, %13, %23 : vector<2x8x8xi1>, vector<2x8x8xi32>
    %cst_8 = arith.constant dense<2147483647> : vector<2x8xi32>
    %25 = vector.multi_reduction <minsi>, %24, %cst_8 [2] : vector<2x8x8xi32> to vector<2x8xi32>
    %26 = vector.shape_cast %25 : vector<2x8xi32> to vector<2x8x1xi32>
    %27 = vector.broadcast %26 : vector<2x8x1xi32> to vector<2x8x8xi32>
    %28 = arith.cmpi eq, %13, %27 : vector<2x8x8xi32>
    %29 = arith.extui %28 : vector<2x8x8xi1> to vector<2x8x8xi32>
    %30 = arith.sitofp %29 : vector<2x8x8xi32> to vector<2x8x8xf32>
    %31 = arith.addf %18, %30 : vector<2x8x8xf32>
    %cst_9 = arith.constant 1.000000e+30 : f32
    %32 = vector.broadcast %cst_9 : f32 to vector<2x8x8xf32>
    %33 = arith.select %28, %32, %17 : vector<2x8x8xi1>, vector<2x8x8xf32>
    %cst_10 = arith.constant dense<0x7F800000> : vector<2x8xf32>
    %34 = vector.multi_reduction <minimumf>, %33, %cst_10 [2] : vector<2x8x8xf32> to vector<2x8xf32>
    %35 = vector.shape_cast %34 : vector<2x8xf32> to vector<2x8x1xf32>
    %36 = vector.broadcast %35 : vector<2x8x1xf32> to vector<2x8x8xf32>
    %37 = arith.cmpf ole, %33, %36 : vector<2x8x8xf32>
    %c8_i32_11 = arith.constant 8 : i32
    %38 = vector.broadcast %c8_i32_11 : i32 to vector<2x8x8xi32>
    %39 = arith.select %37, %13, %38 : vector<2x8x8xi1>, vector<2x8x8xi32>
    %cst_12 = arith.constant dense<2147483647> : vector<2x8xi32>
    %40 = vector.multi_reduction <minsi>, %39, %cst_12 [2] : vector<2x8x8xi32> to vector<2x8xi32>
    %41 = vector.shape_cast %40 : vector<2x8xi32> to vector<2x8x1xi32>
    %42 = vector.broadcast %41 : vector<2x8x1xi32> to vector<2x8x8xi32>
    %43 = arith.cmpi eq, %13, %42 : vector<2x8x8xi32>
    %44 = arith.extui %43 : vector<2x8x8xi1> to vector<2x8x8xi32>
    %45 = arith.sitofp %44 : vector<2x8x8xi32> to vector<2x8x8xf32>
    %46 = arith.addf %31, %45 : vector<2x8x8xf32>
    %cst_13 = arith.constant 1.000000e+30 : f32
    %47 = vector.broadcast %cst_13 : f32 to vector<2x8x8xf32>
    %48 = arith.select %43, %47, %33 : vector<2x8x8xi1>, vector<2x8x8xf32>
    %cst_14 = arith.constant dense<0x7F800000> : vector<2x8xf32>
    %49 = vector.multi_reduction <minimumf>, %48, %cst_14 [2] : vector<2x8x8xf32> to vector<2x8xf32>
    %50 = vector.shape_cast %49 : vector<2x8xf32> to vector<2x8x1xf32>
    %51 = vector.broadcast %50 : vector<2x8x1xf32> to vector<2x8x8xf32>
    %52 = arith.cmpf ole, %48, %51 : vector<2x8x8xf32>
    %c8_i32_15 = arith.constant 8 : i32
    %53 = vector.broadcast %c8_i32_15 : i32 to vector<2x8x8xi32>
    %54 = arith.select %52, %13, %53 : vector<2x8x8xi1>, vector<2x8x8xi32>
    %cst_16 = arith.constant dense<2147483647> : vector<2x8xi32>
    %55 = vector.multi_reduction <minsi>, %54, %cst_16 [2] : vector<2x8x8xi32> to vector<2x8xi32>
    %56 = vector.shape_cast %55 : vector<2x8xi32> to vector<2x8x1xi32>
    %57 = vector.broadcast %56 : vector<2x8x1xi32> to vector<2x8x8xi32>
    %58 = arith.cmpi eq, %13, %57 : vector<2x8x8xi32>
    %59 = arith.extui %58 : vector<2x8x8xi1> to vector<2x8x8xi32>
    %60 = arith.sitofp %59 : vector<2x8x8xi32> to vector<2x8x8xf32>
    %61 = arith.addf %46, %60 : vector<2x8x8xf32>
    "tpu.trace_start"() <{level = 10 : i32, message = "bnm,bmd->bnd"}> : () -> ()
    %cst_17 = arith.constant dense<0.000000e+00> : vector<2x8x32xf32>
    %62 = tpu.matmul %61, %1, %cst_17 {dimension_numbers = #tpu.dot_dimension_numbers<[2], [1], [1], [2], [0, 0, 0, 1, 1, 2], [0], [0]>} : vector<2x8x8xf32>, vector<2x8x32xf32>, vector<2x8x32xf32> -> vector<2x8x32xf32>
    "tpu.trace_stop"() : () -> ()
    %cst_18 = arith.constant 0.333333343 : f32
    %63 = vector.broadcast %cst_18 : f32 to vector<2x8x32xf32>
    %64 = arith.mulf %62, %63 : vector<2x8x32xf32>
    %65 = vector.shape_cast %1 : vector<2x8x32xf32> to vector<16x32xf32>
    %66 = arith.truncf %65 : vector<16x32xf32> to vector<16x32xbf16>
    %67 = vector.shape_cast %64 : vector<2x8x32xf32> to vector<16x32xf32>
    %68 = arith.truncf %67 : vector<16x32xf32> to vector<16x32xbf16>
    %c0_19 = arith.constant 0 : index
    %c0_20 = arith.constant 0 : index
    %c0_21 = arith.constant 0 : index
    %69 = vector.load %arg3[%c0_19, %c0_20, %c0_21] : memref<1x32x32xf32, #tpu.memory_space<vmem>>, vector<1x32x32xf32>
    %70 = vector.shape_cast %69 : vector<1x32x32xf32> to vector<32x32xf32>
    %71 = arith.truncf %70 : vector<32x32xf32> to vector<32x32xbf16>
    %cst_22 = arith.constant dense<0.000000e+00> : vector<16x32xf32>
    %72 = tpu.matmul %68, %71, %cst_22 {dimension_numbers = #tpu.dot_dimension_numbers<[1], [0], [0], [1], [0, 0, 1, 1], [], []>} : vector<16x32xbf16>, vector<32x32xbf16>, vector<16x32xf32> -> vector<16x32xf32>
    %73 = vector.shape_cast %72 : vector<16x32xf32> to vector<2x8x32xf32>
    %c0_23 = arith.constant 0 : index
    %c0_24 = arith.constant 0 : index
    %c0_25 = arith.constant 0 : index
    %74 = vector.load %arg4[%c0_23, %c0_24, %c0_25] : memref<1x32x32xf32, #tpu.memory_space<vmem>>, vector<1x32x32xf32>
    %75 = vector.shape_cast %74 : vector<1x32x32xf32> to vector<32x32xf32>
    %76 = arith.truncf %75 : vector<32x32xf32> to vector<32x32xbf16>
    %cst_26 = arith.constant dense<0.000000e+00> : vector<16x32xf32>
    %77 = tpu.matmul %66, %76, %cst_26 {dimension_numbers = #tpu.dot_dimension_numbers<[1], [0], [0], [1], [0, 0, 1, 1], [], []>} : vector<16x32xbf16>, vector<32x32xbf16>, vector<16x32xf32> -> vector<16x32xf32>
    %78 = vector.shape_cast %77 : vector<16x32xf32> to vector<2x8x32xf32>
    %c0_27 = arith.constant 0 : index
    %c0_28 = arith.constant 0 : index
    %c0_29 = arith.constant 0 : index
    %79 = vector.load %arg5[%c0_27, %c0_28, %c0_29] : memref<1x32x32xf32, #tpu.memory_space<vmem>>, vector<1x32x32xf32>
    %80 = vector.shape_cast %79 : vector<1x32x32xf32> to vector<32x32xf32>
    %81 = arith.truncf %80 : vector<32x32xf32> to vector<32x32xbf16>
    %cst_30 = arith.constant dense<0.000000e+00> : vector<16x32xf32>
    %82 = tpu.matmul %66, %81, %cst_30 {dimension_numbers = #tpu.dot_dimension_numbers<[1], [0], [0], [1], [0, 0, 1, 1], [], []>} : vector<16x32xbf16>, vector<32x32xbf16>, vector<16x32xf32> -> vector<16x32xf32>
    %83 = vector.shape_cast %82 : vector<16x32xf32> to vector<2x8x32xf32>
    "tpu.trace_start"() <{level = 10 : i32, message = "bqd,bkd->bqk"}> : () -> ()
    %cst_31 = arith.constant dense<0.000000e+00> : vector<2x8x8xf32>
    %84 = tpu.matmul %73, %78, %cst_31 {dimension_numbers = #tpu.dot_dimension_numbers<[2], [2], [1], [1], [0, 0, 0, 1, 1, 1], [0], [0]>} : vector<2x8x32xf32>, vector<2x8x32xf32>, vector<2x8x8xf32> -> vector<2x8x8xf32>
    %cst_32 = arith.constant 3.200000e+01 : f32
    "tpu.trace_stop"() : () -> ()
    %85 = math.sqrt %cst_32 : f32
    %cst_33 = arith.constant 1.000000e+00 : f32
    %86 = arith.divf %cst_33, %85 : f32
    %87 = vector.broadcast %86 : f32 to vector<2x8x8xf32>
    %88 = arith.mulf %84, %87 : vector<2x8x8xf32>
    %cst_34 = arith.constant dense<0xFF800000> : vector<2x8xf32>
    %89 = vector.multi_reduction <maximumf>, %88, %cst_34 [2] : vector<2x8x8xf32> to vector<2x8xf32>
    %90 = vector.shape_cast %89 : vector<2x8xf32> to vector<2x8x1xf32>
    %91 = vector.broadcast %90 : vector<2x8x1xf32> to vector<2x8x8xf32>
    %92 = arith.subf %88, %91 : vector<2x8x8xf32>
    %93 = math.exp %92 : vector<2x8x8xf32>
    %cst_35 = arith.constant dense<0.000000e+00> : vector<2x8xf32>
    %94 = vector.multi_reduction <add>, %93, %cst_35 [2] : vector<2x8x8xf32> to vector<2x8xf32>
    %95 = vector.shape_cast %94 : vector<2x8xf32> to vector<2x8x1xf32>
    %96 = tpu.reciprocal %95 {approx = true} : vector<2x8x1xf32> -> vector<2x8x1xf32>
    %97 = vector.broadcast %96 : vector<2x8x1xf32> to vector<2x8x8xf32>
    %98 = arith.mulf %93, %97 : vector<2x8x8xf32>
    %99 = arith.truncf %98 : vector<2x8x8xf32> to vector<2x8x8xbf16>
    %100 = arith.truncf %83 : vector<2x8x32xf32> to vector<2x8x32xbf16>
    "tpu.trace_start"() <{level = 10 : i32, message = "bqk,bkd->bqd"}> : () -> ()
    %cst_36 = arith.constant dense<0.000000e+00> : vector<2x8x32xf32>
    %101 = tpu.matmul %99, %100, %cst_36 {dimension_numbers = #tpu.dot_dimension_numbers<[2], [1], [1], [2], [0, 0, 0, 1, 1, 2], [0], [0]>} : vector<2x8x8xbf16>, vector<2x8x32xbf16>, vector<2x8x32xf32> -> vector<2x8x32xf32>
    "tpu.trace_stop"() : () -> ()
    %102 = vector.shape_cast %101 : vector<2x8x32xf32> to vector<16x32xf32>
    %103 = arith.truncf %102 : vector<16x32xf32> to vector<16x32xbf16>
    %c0_37 = arith.constant 0 : index
    %c0_38 = arith.constant 0 : index
    %c0_39 = arith.constant 0 : index
    %104 = vector.load %arg6[%c0_37, %c0_38, %c0_39] : memref<1x32x32xf32, #tpu.memory_space<vmem>>, vector<1x32x32xf32>
    %105 = vector.shape_cast %104 : vector<1x32x32xf32> to vector<32x32xf32>
    %106 = arith.truncf %105 : vector<32x32xf32> to vector<32x32xbf16>
    %cst_40 = arith.constant dense<0.000000e+00> : vector<16x32xf32>
    %107 = tpu.matmul %103, %106, %cst_40 {dimension_numbers = #tpu.dot_dimension_numbers<[1], [0], [0], [1], [0, 0, 1, 1], [], []>} : vector<16x32xbf16>, vector<32x32xbf16>, vector<16x32xf32> -> vector<16x32xf32>
    %108 = vector.shape_cast %107 : vector<16x32xf32> to vector<2x8x32xf32>
    %109 = arith.addf %64, %108 : vector<2x8x32xf32>
    %110 = vector.shape_cast %109 : vector<2x8x32xf32> to vector<16x32xf32>
    %111 = arith.truncf %110 : vector<16x32xf32> to vector<16x32xbf16>
    %c0_41 = arith.constant 0 : index
    %c0_42 = arith.constant 0 : index
    %c0_43 = arith.constant 0 : index
    %112 = vector.load %arg7[%c0_41, %c0_42, %c0_43] : memref<1x32x32xf32, #tpu.memory_space<vmem>>, vector<1x32x32xf32>
    %113 = vector.shape_cast %112 : vector<1x32x32xf32> to vector<32x32xf32>
    %114 = arith.truncf %113 : vector<32x32xf32> to vector<32x32xbf16>
    %cst_44 = arith.constant dense<0.000000e+00> : vector<16x32xf32>
    %115 = tpu.matmul %111, %114, %cst_44 {dimension_numbers = #tpu.dot_dimension_numbers<[1], [0], [0], [1], [0, 0, 1, 1], [], []>} : vector<16x32xbf16>, vector<32x32xbf16>, vector<16x32xf32> -> vector<16x32xf32>
    %c0_45 = arith.constant 0 : index
    %c0_46 = arith.constant 0 : index
    %c0_47 = arith.constant 0 : index
    %116 = vector.load %arg8[%c0_45, %c0_46, %c0_47] : memref<1x1x32xf32, #tpu.memory_space<vmem>>, vector<1x1x32xf32>
    %117 = vector.shape_cast %116 : vector<1x1x32xf32> to vector<1x32xf32>
    %118 = vector.broadcast %117 : vector<1x32xf32> to vector<16x32xf32>
    %119 = arith.addf %115, %118 : vector<16x32xf32>
    %cst_48 = arith.constant 0.000000e+00 : f32
    %120 = vector.broadcast %cst_48 : f32 to vector<16x32xf32>
    %121 = arith.maximumf %119, %120 : vector<16x32xf32>
    %122 = arith.truncf %121 : vector<16x32xf32> to vector<16x32xbf16>
    %c0_49 = arith.constant 0 : index
    %c0_50 = arith.constant 0 : index
    %c0_51 = arith.constant 0 : index
    %123 = vector.load %arg9[%c0_49, %c0_50, %c0_51] : memref<1x32x32xf32, #tpu.memory_space<vmem>>, vector<1x32x32xf32>
    %124 = vector.shape_cast %123 : vector<1x32x32xf32> to vector<32x32xf32>
    %125 = arith.truncf %124 : vector<32x32xf32> to vector<32x32xbf16>
    %cst_52 = arith.constant dense<0.000000e+00> : vector<16x32xf32>
    %126 = tpu.matmul %122, %125, %cst_52 {dimension_numbers = #tpu.dot_dimension_numbers<[1], [0], [0], [1], [0, 0, 1, 1], [], []>} : vector<16x32xbf16>, vector<32x32xbf16>, vector<16x32xf32> -> vector<16x32xf32>
    %c0_53 = arith.constant 0 : index
    %c0_54 = arith.constant 0 : index
    %c0_55 = arith.constant 0 : index
    %127 = vector.load %arg10[%c0_53, %c0_54, %c0_55] : memref<1x1x32xf32, #tpu.memory_space<vmem>>, vector<1x1x32xf32>
    %128 = vector.shape_cast %127 : vector<1x1x32xf32> to vector<1x32xf32>
    %129 = vector.broadcast %128 : vector<1x32xf32> to vector<16x32xf32>
    %130 = arith.addf %126, %129 : vector<16x32xf32>
    %131 = vector.shape_cast %130 : vector<16x32xf32> to vector<2x8x32xf32>
    %132 = arith.addf %109, %131 : vector<2x8x32xf32>
    %cst_56 = arith.constant dense<0.000000e+00> : vector<2x32xf32>
    %133 = vector.multi_reduction <add>, %132, %cst_56 [1] : vector<2x8x32xf32> to vector<2x32xf32>
    %cst_57 = arith.constant 8.000000e+00 : f32
    %134 = vector.broadcast %cst_57 : f32 to vector<2x32xf32>
    %135 = arith.divf %133, %134 : vector<2x32xf32>
    %c0_58 = arith.constant 0 : index
    %c0_59 = arith.constant 0 : index
    %c0_60 = arith.constant 0 : index
    %136 = vector.load %arg11[%c0_58, %c0_59, %c0_60] : memref<1x2x32xf32, #tpu.memory_space<vmem>>, vector<1x2x32xf32>
    %137 = vector.shape_cast %136 : vector<1x2x32xf32> to vector<2x32xf32>
    %138 = vector.shape_cast %135 : vector<2x32xf32> to vector<1x2x32xf32>
    tpu.vector_store %arg11[%c0_58, %c0_59, %c0_60], %138 {strides = array<i32>} : memref<1x2x32xf32, #tpu.memory_space<vmem>>, vector<1x2x32xf32>,
    return
  }
  func.func @transform_0(%arg0: i32, %arg1: i32) -> (i32, i32, i32, i32) {
    %c0_i32 = arith.constant 0 : i32
    %c0_i32_0 = arith.constant 0 : i32
    %c0_i32_1 = arith.constant 0 : i32
    return %arg0, %arg1, %c0_i32, %c0_i32_0 : i32, i32, i32, i32
  }
  func.func @transform_1(%arg0: i32, %arg1: i32) -> (i32, i32, i32) {
    %c0_i32 = arith.constant 0 : i32
    %c0_i32_0 = arith.constant 0 : i32
    %c0_i32_1 = arith.constant 0 : i32
    return %arg0, %c0_i32, %c0_i32_0 : i32, i32, i32
  }
  func.func @transform_2(%arg0: i32, %arg1: i32) -> (i32, i32, i32) {
    %c0_i32 = arith.constant 0 : i32
    %c0_i32_0 = arith.constant 0 : i32
    %c0_i32_1 = arith.constant 0 : i32
    return %arg0, %c0_i32, %c0_i32_0 : i32, i32, i32
  }
  func.func @transform_3(%arg0: i32, %arg1: i32) -> (i32, i32, i32) {
    %c0_i32 = arith.constant 0 : i32
    %c0_i32_0 = arith.constant 0 : i32
    %c0_i32_1 = arith.constant 0 : i32
    return %arg0, %c0_i32, %c0_i32_0 : i32, i32, i32
  }
  func.func @transform_4(%arg0: i32, %arg1: i32) -> (i32, i32, i32) {
    %c0_i32 = arith.constant 0 : i32
    %c0_i32_0 = arith.constant 0 : i32
    %c0_i32_1 = arith.constant 0 : i32
    return %arg0, %c0_i32, %c0_i32_0 : i32, i32, i32
  }
  func.func @transform_5(%arg0: i32, %arg1: i32) -> (i32, i32, i32) {
    %c0_i32 = arith.constant 0 : i32
    %c0_i32_0 = arith.constant 0 : i32
    %c0_i32_1 = arith.constant 0 : i32
    return %arg0, %c0_i32, %c0_i32_0 : i32, i32, i32
  }
  func.func @transform_6(%arg0: i32, %arg1: i32) -> (i32, i32, i32) {
    %c0_i32 = arith.constant 0 : i32
    %c0_i32_0 = arith.constant 0 : i32
    %c0_i32_1 = arith.constant 0 : i32
    return %arg0, %c0_i32, %c0_i32_0 : i32, i32, i32
  }
  func.func @transform_7(%arg0: i32, %arg1: i32) -> (i32, i32, i32) {
    %c0_i32 = arith.constant 0 : i32
    %c0_i32_0 = arith.constant 0 : i32
    %c0_i32_1 = arith.constant 0 : i32
    return %arg0, %c0_i32, %c0_i32_0 : i32, i32, i32
  }
  func.func @transform_8(%arg0: i32, %arg1: i32) -> (i32, i32, i32) {
    %c0_i32 = arith.constant 0 : i32
    %c0_i32_0 = arith.constant 0 : i32
    %c0_i32_1 = arith.constant 0 : i32
    return %arg0, %c0_i32, %c0_i32_0 : i32, i32, i32
  }
  func.func @transform_9(%arg0: i32, %arg1: i32) -> (i32, i32, i32) {
    %c0_i32 = arith.constant 0 : i32
    %c0_i32_0 = arith.constant 0 : i32
    return %arg0, %arg1, %c0_i32 : i32, i32, i32
  }
}

</mosaic_0001>

<bundles_post_ra>
// kernel: tpu_custom_call.1
= control target key start
LH: loop header
LB: loop body
LE: loop exit
PB: predicated region body
PF: predicated region fallthrough
CT: control target
= control target key end

     0   :  { %s3104_s0 = inlined_call_operand.hbm [shape: f32[3,2,8,32], index: 0, kind: input, shape index: {}]   ;;  %s3105_s1 = inlined_call_operand.hbm [shape: f32[3,32,32], index: 1, kind: input, shape index: {}]   ;;  %s3106_s2 = inlined_call_operand.hbm [shape: f32[3,32,32], index: 2, kind: input, shape index: {}]   ;;  %s3107_s3 = inlined_call_operand.hbm [shape: f32[3,32,32], index: 3, kind: input, shape index: {}]   ;;  %s3108_s4 = inlined_call_operand.hbm [shape: f32[3,32,32], index: 4, kind: input, shape index: {}]   ;;  %s3109_s5 = inlined_call_operand.hbm [shape: f32[3,32,32], index: 5, kind: input, shape index: {}]   ;;  %s3110_s6 = inlined_call_operand.vmem [shape: f32[3,1,32], index: 6, kind: input, shape index: {}]   ;;  %s3111_s7 = inlined_call_operand.hbm [shape: f32[3,32,32], index: 7, kind: input, shape index: {}]   ;;  %s3112_s8 = inlined_call_operand.vmem [shape: f32[3,1,32], index: 8, kind: input, shape index: {}]   ;;  %s3113_s9 = inlined_call_operand.hbm [shape: f32[3,2,32], index: 9, kind: output, shape index: {}]  }
   0x1   :  { %3128 = sst [smem:[#allocation29_spill]] %s3105_s1 }
   0x2   :  { %3129 = sst [smem:[#allocation30_spill]] %s3107_s3 }
   0x3   :  { %3130 = sst [smem:[#allocation31_spill]] %s3109_s5 }
   0x4   :  { %3131 = sst [smem:[#allocation32_spill]] %s3110_s6 }
   0x5   :  { %3132 = sst [smem:[#allocation33_spill]] %s3112_s8 }
   0x6   :  { %3133 = sst [smem:[#allocation34_spill]] %s3113_s9 }
   0x7   :  { %14 = vsyncpa [#allocation3], 0 }
   0x8   :  { %16 = vsyncpa [#allocation3 + $0x1], 0 }
   0x9   :  { %17 = vsyncpa [#allocation6], 0 }
   0xa   :  { %19 = vsyncpa [#allocation6 + $0x1], 0 }
   0xb   :  { %20 = vsyncpa [#allocation9], 0 }
   0xc   :  { %22 = vsyncpa [#allocation9 + $0x1], 0 }
   0xd   :  { %23 = vsyncpa [#allocation12], 0 }
   0xe   :  { %25 = vsyncpa [#allocation12 + $0x1], 0 }
   0xf   :  { %26 = vsyncpa [#allocation4], 0 }
  0x10   :  { %28 = vsyncpa [#allocation4 + $0x1], 0  ;;  %s2641_s30 = smov 0   ;;  %s2643_s10 = smov 0  }
  0x11   :  { %s2645_s11 = smov 0   ;;  %s2647_s12 = smov 0  }
  0x12   :  { %s2649_s13 = smov 0   ;;  %s2651_s14 = smov 0  }
  0x13 LB: > { %3134 = sst [smem:[#allocation20_spill]] %s2557_s30  ;;  %s2672_s15 = sadd.s32 4294967295, %s2577_s14   ;;  %s2577_s14 = sphi %s2651_s14, %s34_s14   ;;  %s2573_s13 = sphi %s2649_s13, %s3170_s13   ;;  %s2569_s12 = sphi %s2647_s12, %s3169_s12   ;;  %s2565_s11 = sphi %s2645_s11, %s3165_s11   ;;  %s2561_s10 = sphi %s2643_s10, %s3168_s10   ;;  %s2557_s30 = sphi %s2641_s30, %s3167_s30  }
  0x14   : > { %3135 = sst [smem:[#allocation21_spill]] %s2565_s11  ;;  %s1991_s16 = sadd.s32 4294967294, %s2577_s14  }
  0x15   : > { %3136 = sst [smem:[#allocation22_spill]] %s2569_s12  ;;  %s46_s17 = sadd.s32 1, %s2573_s13 }
  0x16   : > { %3137 = sst [smem:[#allocation23_spill]] %s2577_s14  ;;  %s55_s18 = sadd.s32 1, %s2565_s11 }
  0x17   : > { %3138 = sst [smem:[#allocation24_spill]] %s2672_s15  ;;  %p48_p0 = scmp.ge.s32.totalorder %s46_s17, 3 }
  0x18   : > { %p62_p1 = scmp.ne.s32.totalorder %s2565_s11, %s2561_s10  ;;  %p63_p2 = scmp.eq.s32.totalorder %s2577_s14, 0 }
  0x19   : > { %p68_p3 = scmp.ne.s32.totalorder %s2561_s10, %s2557_s30  ;;  %s3172_s17 = smov (%p48_p0, %s46_s17), 0 }
  0x1a   : > { %3139 = sst [smem:[#allocation25_spill]] %s3172_s17  ;;  %p64_p4 = por %p63_p2, %p62_p1 }
  0x1b   : > { %p69_p5 = scmp.eq.s32.totalorder %s2672_s15, 0  ;;  %s50_s19 = ssub.s32 %s2573_s13, %s3172_s17 }
  0x1c   : > { %p302_p6 = scmp.eq.s32.totalorder %s2672_s15, 2  ;;  %p53_p7 = scmp.eq.s32.totalorder %s50_s19, 0 }
  0x1d   : > { %p2688_p8 = por %p69_p5, %p68_p3  ;;  %p308_p10 = scmp.eq.s32.totalorder %s1991_s16, 2 }
  0x1e   : > { %p2692_p9 = por %p302_p6, %p62_p1  ;;  %p2227_p12 = scmp.lt.s32.totalorder %s2577_s14, 3 }
  0x1f   : > { %s2697_s22 = scalar_select %p53_p7, %s2565_s11, %s55_s18  }
  0x20   : > { %s3141_s21 = scalar_select %p2692_p9, 1, 0 }
  0x21   : > { %3143 = sst [smem:[#allocation27_spill]] %s2697_s22  ;;  %p2699_p11 = por %p308_p10, %p68_p3 }
  0x22   : > { %3142 = sst [smem:[#allocation26_spill]] %s3141_s21  ;;  %s2705_s24 = sand.u32 1, %s2565_s11  }
  0x23   : > { %s3144_s23 = scalar_select %p2699_p11, 1, 0 }
  0x24   : > { %p2707_p13 = pnand %p2227_p12, %p64_p4  ;;  %s2712_s26 = sand.u32 1, %s2577_s14  }
  0x25   : > { %3145 = sst [smem:[#allocation28_spill]] %s3144_s23  ;;  %s2715_s27 = sshll.u32 %s2705_s24, 5 }
  0x26   : > { %s2718_s28 = sshll.u32 %s2573_s13, 9  ;;  %s355_s29 = scalar_lea.vmem [#allocation5], %s2715_s27 }
  0x27   : > { %s362_s16 = sshll.u32 %s355_s29, 4  ;;  %s3147_s1 = sld [smem:[#allocation29_spill]]  ;;  %s363_s16 = int_to_ptr.vmem [resolvable:$true] %s362_s16 }
  0x28   : > { %s3121_s22 = scalar_lea.sflag [#allocation6], %s2712_s26  ;;  %p2728_p0 = pneg %p2707_p13 }
  0x29   : > { %s2302_s23 = scalar_lea.vmem %s363_s16, 512  ;;  %s2579_s30 = smov [#allocation5]  }
  0x2a   : > { %p2303_p1 = scmp.ne.s32.totalorder %s363_s16, %s2302_s23  ;;  %s2307_s9 = sshll.u32 %s2579_s30, 4  ;;  %s2308_s9 = int_to_ptr.vmem [resolvable:$false] %s2307_s9 }
  0x2b   : > { %s2309_s29 = scalar_lea.vmem %s2308_s9, 1024  ;;  %p2310_p4 = scmp.lt.s32.totalorder %s363_s16, %s2308_s9 }
  0x2c   : > { %p2305_p2 = pnand %p2303_p1, %p2728_p0  ;;  %p2311_p5 = scmp.lt.s32.totalorder %s2309_s29, %s2302_s23 }
  0x2d   : > { %s361_s17 = scalar_lea.hbm %s3147_s1, %s2718_s28 }
  0x2e   : > { %p2306_p3 = pneg %p2305_p2  ;;  %p2312_p6 = por %p2311_p5, %p2310_p4 }
  0x30   : > { %p2313_p7 = pnand %p2312_p6, %p2306_p3 }
  0x32   : > { %2316 = shalt.err (!%p2313_p7)
}
  0x33   : > { %s2580_s18 = smov 128   ;;  %s2581_s19 = smov 8  }
  0x34   : > { %2207 = dma.hbm_to_vmem [thread:$0]  (!%p2707_p13), %s361_s17, 512, %s363_s16, %s3121_s22, %s2580_s18, %s2580_s18, %s2581_s19  }
  0x35   : > { %p2015_p10 = scmp.ge.s32.totalorder %s2577_s14, 1  ;;  %p487_p12 = scmp.lt.s32.totalorder %s2577_s14, 4 }
  0x36   : > { %s3150_s3 = sld [smem:[#allocation30_spill]]  ;;  %s397_s1 = scalar_lea.vmem [#allocation8], %s2715_s27 }
  0x37   : > { %p2743_p1 = pnand %p2015_p10, %p487_p12  ;;  %s404_s21 = sshll.u32 %s397_s1, 4  ;;  %s405_s21 = int_to_ptr.vmem [resolvable:$true] %s404_s21 }
  0x38   : > { %s3125_s8 = scalar_lea.sflag [#allocation9], %s2712_s26  ;;  %s2330_s6 = scalar_lea.vmem %s405_s21, 512 }
  0x39   : > { %p2331_p2 = scmp.ne.s32.totalorder %s405_s21, %s2330_s6  ;;  %s2582_s17 = smov [#allocation8]  }
  0x3a   : > { %s2335_s16 = sshll.u32 %s2582_s17, 4  ;;  %s2336_s16 = int_to_ptr.vmem [resolvable:$false] %s2335_s16 }
  0x3b   : > { %p2333_p3 = pnand %p2331_p2, %p2728_p0  ;;  %s2337_s22 = scalar_lea.vmem %s2336_s16, 1024 }
  0x3c   : > { %s403_s29 = scalar_lea.hbm %s3150_s3, %s2718_s28  ;;  %p2338_p5 = scmp.lt.s32.totalorder %s405_s21, %s2336_s16 }
  0x3d   : > { %p2334_p4 = pneg %p2333_p3  ;;  %p2339_p6 = scmp.lt.s32.totalorder %s2337_s22, %s2330_s6 }
  0x3f   : > { %p2340_p7 = por %p2339_p6, %p2338_p5 }
  0x41   : > { %p2341_p10 = pnand %p2340_p7, %p2334_p4 }
  0x43   : > { %2344 = shalt.err (!%p2341_p10)
}
  0x44   : > { %2213 = dma.hbm_to_vmem [thread:$0]  (!%p2707_p13), %s403_s29, 512, %s405_s21, %s3125_s8, %s2580_s18, %s2580_s18, %s2581_s19  }
  0x45   : > { %s3151_s5 = sld [smem:[#allocation31_spill]]  ;;  %s439_s6 = scalar_lea.vmem [#allocation11], %s2715_s27 }
  0x46   : > { %s446_s22 = sshll.u32 %s439_s6, 4  ;;  %s3127_s17 = scalar_lea.sflag [#allocation12], %s2712_s26  ;;  %s447_s22 = int_to_ptr.vmem [resolvable:$true] %s446_s22 }
  0x47   : > { %s2358_s16 = scalar_lea.vmem %s447_s22, 512  ;;  %s2583_s3 = smov [#allocation11]  }
  0x48   : > { %p2359_p12 = scmp.ne.s32.totalorder %s447_s22, %s2358_s16  ;;  %s2363_s14 = sshll.u32 %s2583_s3, 4  ;;  %s2364_s14 = int_to_ptr.vmem [resolvable:$false] %s2363_s14 }
  0x49   : > { %s2365_s12 = scalar_lea.vmem %s2364_s14, 1024  ;;  %p2366_p4 = scmp.lt.s32.totalorder %s447_s22, %s2364_s14 }
  0x4a   : > { %p2361_p2 = pnand %p2359_p12, %p2728_p0  ;;  %p2367_p5 = scmp.lt.s32.totalorder %s2365_s12, %s2358_s16 }
  0x4b   : > { %s445_s23 = scalar_lea.hbm %s3151_s5, %s2718_s28 }
  0x4c   : > { %p2362_p3 = pneg %p2361_p2  ;;  %p2368_p6 = por %p2367_p5, %p2366_p4 }
  0x4e   : > { %p2369_p7 = pnand %p2368_p6, %p2362_p3 }
  0x50   : > { %2372 = shalt.err (!%p2369_p7)
}
  0x51   : > { %2219 = dma.hbm_to_vmem [thread:$0]  (!%p2707_p13), %s445_s23, 512, %s447_s22, %s3127_s17, %s2580_s18, %s2580_s18, %s2581_s19  }
  0x52   : > { %s1994_s3 = sshll.u32 %s2705_s24, 4  ;;  %s2054_s21 = sshll.u32 %s2573_s13, 8 }
  0x53   : > { %s340_s29 = scalar_lea.hbm %s3104_s0, %s2054_s21  ;;  %s332_s1 = scalar_lea.vmem [#allocation2], %s1994_s3 }
  0x54   : > { %s341_s30 = sshll.u32 %s332_s1, 4  ;;  %s382_s8 = scalar_lea.hbm %s3106_s2, %s2718_s28  ;;  %s342_s30 = int_to_ptr.vmem [resolvable:$true] %s341_s30 }
  0x55   : > { %s329_s5 = scalar_lea.sflag [#allocation3], %s2705_s24  ;;  %s2386_s15 = scalar_lea.vmem %s342_s30, 256 }
  0x56   : > { %p2387_p10 = scmp.ne.s32.totalorder %s342_s30, %s2386_s15  ;;  %s2584_s23 = smov [#allocation2]  }
  0x57   : > { %s2391_s22 = sshll.u32 %s2584_s23, 4  ;;  %s2392_s22 = int_to_ptr.vmem [resolvable:$false] %s2391_s22 }
  0x58   : > { %p2389_p12 = pnand %p2387_p10, %p2728_p0  ;;  %s2393_s17 = scalar_lea.vmem %s2392_s22, 512 }
  0x59   : > { %p2394_p3 = scmp.lt.s32.totalorder %s342_s30, %s2392_s22  ;;  %p2395_p4 = scmp.lt.s32.totalorder %s2393_s17, %s2386_s15 }
  0x5a   : > { %p2390_p2 = pneg %p2389_p12 }
  0x5b   : > { %p2396_p5 = por %p2395_p4, %p2394_p3 }
  0x5d   : > { %p2397_p6 = pnand %p2396_p5, %p2390_p2 }
  0x5f   : > { %2400 = shalt.err (!%p2397_p6)
}
  0x60   : > { %2204 = dma.hbm_to_vmem [thread:$0]  (!%p2707_p13), %s340_s29, 256, %s342_s30, %s329_s5, %s2580_s18, %s2580_s18, %s2581_s19  }
  0x61   : > { %s376_s24 = scalar_lea.vmem [#allocation7], %s2715_s27  ;;  %s424_s12 = scalar_lea.hbm %s3108_s4, %s2718_s28 }
  0x62   : > { %s383_s3 = sshll.u32 %s376_s24, 4  ;;  %s2585_s17 = smov [#allocation7]   ;;  %s384_s3 = int_to_ptr.vmem [resolvable:$true] %s383_s3 }
  0x63   : > { %s2414_s15 = scalar_lea.vmem %s384_s3, 512  ;;  %s2419_s1 = sshll.u32 %s2585_s17, 4  ;;  %s2420_s1 = int_to_ptr.vmem [resolvable:$false] %s2419_s1 }
  0x64   : > { %p2415_p7 = scmp.ne.s32.totalorder %s384_s3, %s2414_s15  ;;  %s2421_s6 = scalar_lea.vmem %s2420_s1, 1024 }
  0x65   : > { %p2422_p2 = scmp.lt.s32.totalorder %s384_s3, %s2420_s1  ;;  %p2423_p3 = scmp.lt.s32.totalorder %s2421_s6, %s2414_s15 }
  0x66   : > { %p2417_p10 = pnand %p2415_p7, %p2728_p0 }
  0x67   : > { %p2424_p4 = por %p2423_p3, %p2422_p2 }
  0x68   : > { %p2418_p12 = pneg %p2417_p10 }
  0x6a   : > { %p2425_p5 = pnand %p2424_p4, %p2418_p12 }
  0x6c   : > { %2428 = shalt.err (!%p2425_p5)
}
  0x6d   : > { %s3152_s5 = scalar_lea.sflag [#allocation6], %s2712_s26  ;;  %s418_s16 = scalar_lea.vmem [#allocation10], %s2715_s27 }
  0x6e   : > { %2210 = dma.hbm_to_vmem [thread:$0]  (!%p2707_p13), %s382_s8, 512, %s384_s3, %s3152_s5, %s2580_s18, %s2580_s18, %s2581_s19  }
  0x6f   : > { %s425_s23 = sshll.u32 %s418_s16, 4  ;;  %s472_s21 = scalar_lea.hbm %s3111_s7, %s2718_s28  ;;  %s426_s23 = int_to_ptr.vmem [resolvable:$true] %s425_s23 }
  0x70   : > { %s2442_s14 = scalar_lea.vmem %s426_s23, 512  ;;  %s2586_s15 = smov [#allocation10]  }
  0x71   : > { %p2443_p6 = scmp.ne.s32.totalorder %s426_s23, %s2442_s14  ;;  %s2447_s17 = sshll.u32 %s2586_s15, 4  ;;  %s2448_s17 = int_to_ptr.vmem [resolvable:$false] %s2447_s17 }
  0x72   : > { %s2449_s1 = scalar_lea.vmem %s2448_s17, 1024  ;;  %p2450_p12 = scmp.lt.s32.totalorder %s426_s23, %s2448_s17 }
  0x73   : > { %p2445_p7 = pnand %p2443_p6, %p2728_p0  ;;  %p2451_p2 = scmp.lt.s32.totalorder %s2449_s1, %s2442_s14 }
  0x75   : > { %p2446_p10 = pneg %p2445_p7  ;;  %p2452_p3 = por %p2451_p2, %p2450_p12 }
  0x77   : > { %p2453_p4 = pnand %p2452_p3, %p2446_p10 }
  0x79   : > { %2456 = shalt.err (!%p2453_p4)
}
  0x7a   : > { %s3153_s8 = scalar_lea.sflag [#allocation9], %s2712_s26  ;;  %s466_s5 = scalar_lea.vmem [#allocation13], %s2715_s27 }
  0x7b   : > { %2216 = dma.hbm_to_vmem [thread:$0]  (!%p2707_p13), %s424_s12, 512, %s426_s23, %s3153_s8, %s2580_s18, %s2580_s18, %s2581_s19  }
  0x7c   : > { %s473_s29 = sshll.u32 %s466_s5, 4  ;;  %s2587_s16 = smov [#allocation13]   ;;  %s474_s29 = int_to_ptr.vmem [resolvable:$true] %s473_s29 }
  0x7d   : > { %s2470_s30 = scalar_lea.vmem %s474_s29, 512  ;;  %s2475_s22 = sshll.u32 %s2587_s16, 4  ;;  %s2476_s22 = int_to_ptr.vmem [resolvable:$false] %s2475_s22 }
  0x7e   : > { %p2471_p5 = scmp.ne.s32.totalorder %s474_s29, %s2470_s30  ;;  %s2477_s24 = scalar_lea.vmem %s2476_s22, 1024 }
  0x7f   : > { %p2478_p10 = scmp.lt.s32.totalorder %s474_s29, %s2476_s22  ;;  %p2479_p12 = scmp.lt.s32.totalorder %s2477_s24, %s2470_s30 }
  0x80   : > { %p2473_p6 = pnand %p2471_p5, %p2728_p0 }
  0x81   : > { %p2480_p2 = por %p2479_p12, %p2478_p10 }
  0x82   : > { %p2474_p7 = pneg %p2473_p6 }
  0x84   : > { %p2481_p3 = pnand %p2480_p2, %p2474_p7 }
  0x86   : > { %2484 = shalt.err (!%p2481_p3)
}
  0x87   : > { %s3154_s27 = scalar_lea.sflag [#allocation12], %s2712_s26  ;;  %491 = sbr.rel (%p2743_p1) target bundleno = 3388 (0xd3c), region = 56 }
  0x88   : > { %2222 = dma.hbm_to_vmem [thread:$0]  (!%p2707_p13), %s472_s21, 512, %s474_s29, %s3154_s27, %s2580_s18, %s2580_s18, %s2581_s19  }
  0x89   : > { %s2850_s23 = sand.u32 (!%p2743_p1), 1, %s2561_s10  }
  0x8a   : > { %s2016_s25 = sshll.u32 (!%p2743_p1), %s2850_s23, 4  ;;  %s494_s14 = scalar_lea.sflag (!%p2743_p1), [#allocation3], %s2850_s23 }
  0x8b   : > { %s497_s15 = scalar_lea.vmem (!%p2743_p1), [#allocation2], %s2016_s25 }
  0x8c   : > { %2536 = dma.done.wait (%p2688_p8), %s494_s14, 256  }
  0x8d   : > { %2538 = vsyncadd (%p2688_p8), %s494_s14, 4294967040  ;;  %s3155_s26 = sld [smem:[#allocation24_spill]]  ;;  %s2860_s18 = sshll.u32 %s2850_s23, 5 }
  0x8e   : > { %s2863_s9 = scalar_lea.vmem [#allocation5], %s2860_s18 }
  0x93   : > { %s502_s28 = sand.u32 1, %s3155_s26  }
  0x94   : > { %s503_s19 = scalar_lea.sflag [#allocation6], %s502_s28 }
  0x95   : > { %2540 = dma.done.wait (%p2688_p8), %s503_s19, 1024  }
  0x96   : > { %2542 = vsyncadd (%p2688_p8), %s503_s19, 4294966272  ;;  %s2870_s21 = scalar_lea.vmem [#allocation7], %s2860_s18  ;;  %s521_s17 = scalar_lea.sflag [#allocation9], %s502_s28 }
  0x97   : > { %s2873_s1 = scalar_lea.vmem [#allocation8], %s2860_s18 }
  0x98   : > { %2544 = dma.done.wait (%p2688_p8), %s521_s17, 1024  }
  0x99   : > { %2546 = vsyncadd (%p2688_p8), %s521_s17, 4294966272  ;;  %s2880_s8 = scalar_lea.vmem [#allocation10], %s2860_s18  ;;  %s539_s3 = scalar_lea.sflag [#allocation12], %s502_s28 }
  0x9a   : > { %s2883_s6 = scalar_lea.vmem [#allocation11], %s2860_s18 }
  0x9b   : > { %2548 = dma.done.wait (%p2688_p8), %s539_s3, 1024  }
  0x9c   : > { %2550 = vsyncadd (%p2688_p8), %s539_s3, 4294966272  ;;  %v2588_v0 = vmov 0.0   ;;  %vm2589_vm0 = vmmov 0   ;;  %vm632_vm1 = vcmask 261120   ;;  %v2895_v1 = vld [vmem:[%s497_s15] sm:$0xff]  ;;  %v2897_v2 = vld [vmem:[%s497_s15 + $0x8] sm:$0xff]  ;;  %v789_v7 = vlaneseq }
  0x9d   : > { %2095 = vmatprep.subr.mxu1 %v2588_v0  ;;  %2097 = vmatprep.mubr.msk.f32.mxu1 %vm2589_vm0, %v2588_v0  ;;  %v779_v3 = vmul.f32 %v2895_v1, %v2895_v1  ;;  %v780_v4 = vmul.f32 %v2897_v2, %v2897_v2  ;;  %vm831_vm3 = vcmask 64512   ;;  %s3156_s20 = sld [smem:[#allocation22_spill]]  ;;  %s551_s5 = scalar_lea.vmem [#allocation13], %s2860_s18 }
  0x9e   : > { %2105 = vmatprep.subr.mxu0 %v2588_v0  ;;  %2107 = vmatprep.mubr.msk.f32.mxu0 %vm2589_vm0, %v2588_v0  ;;  %v2923_v8 = vand.u32 127, %v789_v7  ;;  %v792_v9 = vshrl.u32 %v789_v7, 7  ;;  %s3157_s22 = sld [smem:[#allocation32_spill]]  ;;  %s2023_s14 = sshll.u32 %s2850_s23, 1 }
  0x9f   : > { %2096 = vmatpush3.xpose.msk.msra.mxu1 %vm632_vm1, %v2895_v1  ;;  %2106 = vmatpush3.msra.mxu0 %v2895_v1  ;;  %v781_v5 = vsel %vm632_vm1, %v779_v3, 0.0  ;;  %v784_v6 = vsel %vm632_vm1, %v780_v4, 0.0  ;;  %s3158_s11 = sld [smem:[#allocation33_spill]]  ;;  %s621_s28 = scalar_lea.vmem [#allocation14], %s2023_s14 }
  0xa0   : > { %2100 = vmatprep.subr.mxu1 %v2588_v0  ;;  %2115 = vmatprep.subr.bf16.mxu0 %v2588_v0  ;;  %v793_v11 = vsub.s32 %v2923_v8, %v792_v9  ;;  %vm828_vm2 = vcmp.eq.s32.totalorder %v792_v9, %v2923_v8  ;;  %s1761_s18 = sshll.u32 %s621_s28, 4  ;;  %s2590_s3 = smov [#allocation14]   ;;  %s1762_s18 = int_to_ptr.vmem [resolvable:$true] %s1761_s18 }
  0xa1   : > { %782 = vadd.xlane.f32.xlu0 %v781_v5 }
  0xa2   : > { %2098 = vmatmul.mubr.msk.f32.vlgmr.msra.gmra.mxu1 %vm632_vm1, %v2895_v1 }
  0xa3   : > { %2101 = vmatpush3.xpose.msk.msra.mxu1 %vm632_vm1, %v2897_v2  ;;  %2102 = vmatprep.mubr.msk.f32.mxu1 %vm2589_vm0, %v2588_v0  ;;  %p623_p8 = scmp.lt.s32.totalorder %s3156_s20, 2  ;;  %s2051_s26 = sshll.u32 %s3156_s20, 5 }
  0xa4   : > { %2110 = vmatprep.subr.mxu1 %v2588_v0 }
  0xa5   : > { %785 = vadd.xlane.f32.xlu0 %v784_v6  ;;  %s624_s29 = scalar_select %p623_p8, %s3156_s20, 2 }
  0xa6   : > { %2103 = vmatmul.mubr.msk.f32.vlgmr.msra.gmra.mxu1 %vm632_vm1, %v2897_v2 }
  0xa7   : > { %2111 = vmatpush3.msra.mxu1 %v2897_v2  ;;  %2112 = vmatprep.mubr.msk.f32.mxu1 %vm2589_vm0, %v2588_v0  ;;  %s625_s24 = scalar_lea.vmem %s3157_s22, %s624_s29  ;;  %s628_s25 = scalar_lea.vmem %s3158_s11, %s624_s29 }
  0xa8   : > { %2123 = vmatprep.subr.bf16.mxu1 %v2588_v0 }
 0x12a   : > { %v783_v10 = vpop.xlane.xlu0 %782 }
 0x12b   : > { %v794_v12 = vrot.slane %v783_v10, %v793_v11 }
 0x12d   : > { %v820_v15 = vadd.f32 %v794_v12, %v783_v10 }
 0x12e   : > { %v786_v13 = vpop.xlane.xlu0 %785 }
 0x12f   : > { %v798_v17 = vrot.slane %v786_v13, %v793_v11 }
 0x131   : > { %v821_v21 = vadd.f32 %v798_v17, %v786_v13 }
 0x162   : > { %v702_v14 = vpop.f32.mrf.mxu1 }
 0x163   : > { %v822_v16 = vmul.f32 2.0, %v702_v14 }
 0x164   : > { %v2099_v18 = vpop.f32.mrf.mxu1 }
 0x165   : > { %v824_v19 = vsub.f32 %v820_v15, %v822_v16 }
 0x166   : > { %v775_v20 = vpop.f32.mrf.mxu1 }
 0x167   : > { %v823_v22 = vmul.f32 2.0, %v775_v20  ;;  %v829_v23 = vsel %vm828_vm2, 1e+30, %v824_v19 }
 0x168   : > { %v2104_v24 = vpop.f32.mrf.mxu1  ;;  %v832_v25 = vsel %vm831_vm3, %v829_v23, inf }
 0x169   : > { %v825_v26 = vsub.f32 %v821_v21, %v823_v22  ;;  %833 = vmin.xlane.f32.xlu1 %v832_v25 }
 0x16b   : > { %v830_v27 = vsel %vm828_vm2, 1e+30, %v825_v26 }
 0x16c   : > { %v835_v28 = vsel %vm831_vm3, %v830_v27, inf }
 0x16d   : > { %836 = vmin.xlane.f32.xlu1 %v835_v28 }
 0x1f2   : > { %v834_v29 = vpop.xlane.xlu1 %833 }
 0x1f3   : > { %vm838_vm4 = vcmp.le.f32.partialorder %v829_v23, %v834_v29 }
 0x1f4   : > { %v840_v30 = vsel %vm838_vm4, %v2923_v8, 8 }
 0x1f5   : > { %v842_v31 = vsel %vm831_vm3, %v840_v30, 2147483647 }
 0x1f6   : > { %v837_v32 = vpop.xlane.xlu1 %836  ;;  %v844_v33 = vshra.s32 %v842_v31, 16  ;;  %v843_v39 = vand.u32 65535, %v842_v31 }
 0x1f7   : > { %vm839_vm5 = vcmp.le.f32.partialorder %v830_v27, %v837_v32 }
 0x1f8   : > { %v841_v34 = vsel %vm839_vm5, %v2923_v8, 8  ;;  %v846_v35 = vcvt.s32.f32 %v844_v33  ;;  %v845_v41 = vcvt.s32.f32 %v843_v39 }
 0x1f9   : > { %v857_v36 = vsel %vm831_vm3, %v841_v34, 2147483647 }
 0x1fa   : > { %847 = vmin.xlane.f32.xlu0 %v846_v35  ;;  %v859_v37 = vshra.s32 %v857_v36, 16  ;;  %v858_v42 = vand.u32 65535, %v857_v36 }
 0x1fc   : > { %v861_v38 = vcvt.s32.f32 %v859_v37  ;;  %v860_v45 = vcvt.s32.f32 %v858_v42 }
 0x1fe   : > { %862 = vmin.xlane.f32.xlu1 %v861_v38 }
 0x283   : > { %v848_v40 = vpop.xlane.xlu0 %847 }
 0x284   : > { %vm849_vm6 = vcmp.eq.f32.partialorder %v846_v35, %v848_v40  ;;  %v854_v47 = vcvt.f32.s32 %v848_v40 }
 0x285   : > { %v850_v43 = vsel %vm849_vm6, %v845_v41, inf }
 0x286   : > { %851 = vmin.xlane.f32.xlu0 %v850_v43  ;;  %v855_v49 = vshll.u32 %v854_v47, 16 }
 0x287   : > { %v863_v44 = vpop.xlane.xlu1 %862 }
 0x288   : > { %vm864_vm7 = vcmp.eq.f32.partialorder %v861_v38, %v863_v44  ;;  %v869_v50 = vcvt.f32.s32 %v863_v44 }
 0x289   : > { %v865_v46 = vsel %vm864_vm7, %v860_v45, inf }
 0x28a   : > { %866 = vmin.xlane.f32.xlu1 %v865_v46  ;;  %v870_v54 = vshll.u32 %v869_v50, 16 }
 0x30f   : > { %v852_v48 = vpop.xlane.xlu0 %851 }
 0x310   : > { %v853_v51 = vcvt.f32.s32 %v852_v48 }
 0x312   : > { %v856_v52 = vadd.s32 %v855_v49, %v853_v51 }
 0x313   : > { %v867_v53 = vpop.xlane.xlu1 %866 }
 0x314   : > { %v868_v55 = vcvt.f32.s32 %v867_v53  ;;  %vm872_vm8 = vcmp.eq.s32.totalorder %v2923_v8, %v856_v52 }
 0x315   : > { %v880_v56 = vsel %vm872_vm8, 1e+30, %v829_v23  ;;  %v2028_v28 = vsel %vm872_vm8, 1.0, %v2588_v0 }
 0x316   : > { %v871_v57 = vadd.s32 %v870_v54, %v868_v55  ;;  %v882_v58 = vsel %vm831_vm3, %v880_v56, inf }
 0x317   : > { %883 = vmin.xlane.f32.xlu0 %v882_v58 }
 0x318   : > { %vm873_vm9 = vcmp.eq.s32.totalorder %v2923_v8, %v871_v57 }
 0x319   : > { %v881_v59 = vsel %vm873_vm9, 1e+30, %v830_v27  ;;  %v2029_v34 = vsel %vm873_vm9, 1.0, %v2588_v0  ;;  %vm1460_vm9 = vcmask 1043456  }
 0x31a   : > { %v885_v60 = vsel %vm831_vm3, %v881_v59, inf }
 0x31b   : > { %886 = vmin.xlane.f32.xlu1 %v885_v60 }
 0x3a0   : > { %v884_v61 = vpop.xlane.xlu0 %883 }
 0x3a1   : > { %vm888_vm10 = vcmp.le.f32.partialorder %v880_v56, %v884_v61 }
 0x3a2   : > { %v890_v62 = vsel %vm888_vm10, %v2923_v8, 8 }
 0x3a3   : > { %v892_v63 = vsel %vm831_vm3, %v890_v62, 2147483647 }
 0x3a4   : > { %v887_v3 = vpop.xlane.xlu1 %886  ;;  %v894_v4 = vshra.s32 %v892_v63, 16  ;;  %v893_v11 = vand.u32 65535, %v892_v63 }
 0x3a5   : > { %vm889_vm11 = vcmp.le.f32.partialorder %v881_v59, %v887_v3 }
 0x3a6   : > { %v891_v5 = vsel %vm889_vm11, %v2923_v8, 8  ;;  %v896_v6 = vcvt.s32.f32 %v894_v4  ;;  %v895_v13 = vcvt.s32.f32 %v893_v11 }
 0x3a7   : > { %v907_v7 = vsel %vm831_vm3, %v891_v5, 2147483647 }
 0x3a8   : > { %897 = vmin.xlane.f32.xlu0 %v896_v6  ;;  %v909_v9 = vshra.s32 %v907_v7, 16  ;;  %v908_v14 = vand.u32 65535, %v907_v7 }
 0x3aa   : > { %v911_v10 = vcvt.s32.f32 %v909_v9  ;;  %v910_v17 = vcvt.s32.f32 %v908_v14  ;;  %v1182_v9 = vld [vmem:[%s2870_s21 + $0x10] sm:$0xff]  ;;  %v1180_v14 = vld [vmem:[%s2870_s21] sm:$0xff] }
 0x3ac   : > { %912 = vmin.xlane.f32.xlu1 %v911_v10 }
 0x431   : > { %v898_v12 = vpop.xlane.xlu0 %897 }
 0x432   : > { %vm899_vm12 = vcmp.eq.f32.partialorder %v896_v6, %v898_v12  ;;  %v904_v19 = vcvt.f32.s32 %v898_v12 }
 0x433   : > { %v900_v15 = vsel %vm899_vm12, %v895_v13, inf }
 0x434   : > { %901 = vmin.xlane.f32.xlu0 %v900_v15  ;;  %v905_v21 = vshll.u32 %v904_v19, 16  ;;  %v1181_v15 = vld [vmem:[%s2870_s21 + $0x8] sm:$0xff] }
 0x435   : > { %v913_v16 = vpop.xlane.xlu1 %912 }
 0x436   : > { %vm914_vm13 = vcmp.eq.f32.partialorder %v911_v10, %v913_v16  ;;  %v919_v22 = vcvt.f32.s32 %v913_v16  ;;  %v1183_v10 = vld [vmem:[%s2870_s21 + $0x18] sm:$0xff]  ;;  %v1184_v16 = vpack.c.bf16 %v1181_v15, %v1180_v14  ;;  %s3160_s21 = sld [smem:[#allocation34_spill]] }
 0x437   : > { %v915_v18 = vsel %vm914_vm13, %v910_v17, inf  ;;  %v1185_v12 = vpack.c.bf16 %v1183_v10, %v1182_v9  ;;  %v1132_v17 = vld [vmem:[%s2863_s9 + $0x10] sm:$0xff] }
 0x438   : > { %916 = vmin.xlane.f32.xlu1 %v915_v18  ;;  %v920_v26 = vshll.u32 %v919_v22, 16  ;;  %v1133_v18 = vld [vmem:[%s2863_s9 + $0x18] sm:$0xff] }
 0x439   : > { %v1135_v19 = vpack.c.bf16 %v1133_v18, %v1132_v17  ;;  %v1551_v18 = vld [vmem:[%s2880_s8] sm:$0xff] }
 0x43c   : > { %s3063_s17 = scalar_lea.hbm %s3160_s21, %s2051_s26 }
 0x4bd   : > { %v902_v20 = vpop.xlane.xlu0 %901 }
 0x4be   : > { %v903_v23 = vcvt.f32.s32 %v902_v20  ;;  %v1130_v20 = vld [vmem:[%s2863_s9] sm:$0xff] }
 0x4c0   : > { %v906_v24 = vadd.s32 %v905_v21, %v903_v23  ;;  %v1131_v21 = vld [vmem:[%s2863_s9 + $0x8] sm:$0xff] }
 0x4c1   : > { %v917_v25 = vpop.xlane.xlu1 %916  ;;  %v1134_v22 = vpack.c.bf16 %v1131_v21, %v1130_v20 }
 0x4c2   : > { %v918_v27 = vcvt.f32.s32 %v917_v25  ;;  %vm922_vm14 = vcmp.eq.s32.totalorder %v2923_v8, %v906_v24 }
 0x4c3   : > { %v930_v29 = vsel %vm922_vm14, 1e+30, %v880_v56  ;;  %v2030_v30 = vsel %vm922_vm14, 1.0, %v2588_v0 }
 0x4c4   : > { %v921_v31 = vadd.s32 %v920_v26, %v918_v27  ;;  %v932_v32 = vsel %vm831_vm3, %v930_v29, inf  ;;  %v928_v33 = vadd.f32 %v2030_v30, %v2028_v28 }
 0x4c5   : > { %933 = vmin.xlane.f32.xlu0 %v932_v32 }
 0x4c6   : > { %vm923_vm15 = vcmp.eq.s32.totalorder %v2923_v8, %v921_v31 }
 0x4c7   : > { %v931_v35 = vsel %vm923_vm15, 1e+30, %v881_v59  ;;  %v2031_v36 = vsel %vm923_vm15, 1.0, %v2588_v0 }
 0x4c8   : > { %v935_v37 = vsel %vm831_vm3, %v931_v35, inf  ;;  %v929_v38 = vadd.f32 %v2031_v36, %v2029_v34  ;;  %v1232_v36 = vld [vmem:[%s2873_s1 + $0x10] sm:$0xff] }
 0x4c9   : > { %936 = vmin.xlane.f32.xlu1 %v935_v37  ;;  %v1233_v37 = vld [vmem:[%s2873_s1 + $0x18] sm:$0xff] }
 0x54e   : > { %v934_v39 = vpop.xlane.xlu0 %933 }
 0x54f   : > { %vm938_vm2 = vcmp.le.f32.partialorder %v930_v29, %v934_v39  ;;  %v1235_v39 = vpack.c.bf16 %v1233_v37, %v1232_v36 }
 0x550   : > { %v940_v40 = vsel %vm938_vm2, %v2923_v8, 8 }
 0x551   : > { %v942_v41 = vsel %vm831_vm3, %v940_v40, 2147483647  ;;  %v1231_v40 = vld [vmem:[%s2873_s1 + $0x8] sm:$0xff] }
 0x552   : > { %v937_v42 = vpop.xlane.xlu1 %936  ;;  %v944_v43 = vshra.s32 %v942_v41, 16  ;;  %v943_v49 = vand.u32 65535, %v942_v41 }
 0x553   : > { %vm939_vm4 = vcmp.le.f32.partialorder %v931_v35, %v937_v42 }
 0x554   : > { %v941_v44 = vsel %vm939_vm4, %v2923_v8, 8  ;;  %v946_v45 = vcvt.s32.f32 %v944_v43  ;;  %v945_v51 = vcvt.s32.f32 %v943_v49 }
 0x555   : > { %v957_v46 = vsel %vm831_vm3, %v941_v44, 2147483647 }
 0x556   : > { %947 = vmin.xlane.f32.xlu0 %v946_v45  ;;  %v959_v47 = vshra.s32 %v957_v46, 16  ;;  %v958_v52 = vand.u32 65535, %v957_v46 }
 0x558   : > { %v961_v48 = vcvt.s32.f32 %v959_v47  ;;  %v960_v55 = vcvt.s32.f32 %v958_v52 }
 0x55a   : > { %962 = vmin.xlane.f32.xlu1 %v961_v48 }
 0x5df   : > { %v948_v50 = vpop.xlane.xlu0 %947 }
 0x5e0   : > { %vm949_vm5 = vcmp.eq.f32.partialorder %v946_v45, %v948_v50  ;;  %v954_v57 = vcvt.f32.s32 %v948_v50 }
 0x5e1   : > { %v950_v53 = vsel %vm949_vm5, %v945_v51, inf }
 0x5e2   : > { %951 = vmin.xlane.f32.xlu0 %v950_v53  ;;  %v955_v59 = vshll.u32 %v954_v57, 16 }
 0x5e3   : > { %v963_v54 = vpop.xlane.xlu1 %962 }
 0x5e4   : > { %vm964_vm6 = vcmp.eq.f32.partialorder %v961_v48, %v963_v54  ;;  %v969_v60 = vcvt.f32.s32 %v963_v54 }
 0x5e5   : > { %v965_v56 = vsel %vm964_vm6, %v960_v55, inf }
 0x5e6   : > { %966 = vmin.xlane.f32.xlu1 %v965_v56  ;;  %v970_v3 = vshll.u32 %v969_v60, 16 }
 0x66b   : > { %v952_v58 = vpop.xlane.xlu0 %951 }
 0x66c   : > { %v953_v61 = vcvt.f32.s32 %v952_v58 }
 0x66e   : > { %v956_v62 = vadd.s32 %v955_v59, %v953_v61 }
 0x66f   : > { %v967_v63 = vpop.xlane.xlu1 %966 }
 0x670   : > { %vm972_vm7 = vcmp.eq.s32.totalorder %v2923_v8, %v956_v62  ;;  %v968_v4 = vcvt.f32.s32 %v967_v63 }
 0x671   : > { %v2032_v5 = vsel %vm972_vm7, 1.0, %v2588_v0 }
 0x672   : > { %v978_v6 = vadd.f32 %v2032_v5, %v928_v33  ;;  %v971_v7 = vadd.s32 %v970_v3, %v968_v4 }
 0x674   : > { %vm973_vm8 = vcmp.eq.s32.totalorder %v2923_v8, %v971_v7  ;;  %2108 = vmatmul.mubr.msk.f32.vlgmr.msra.gmra.mxu0 %vm831_vm3, %v978_v6  ;;  %v1128_v8 = vpack.c.bf16 %v2897_v2, %v2895_v1 }
 0x675   : > { %v2033_v11 = vsel %vm973_vm8, 1.0, %v2588_v0  ;;  %2119 = vmatprep.mubr.msk.bf16.mxu0 %vm2589_vm0, %v2588_v0  ;;  %2116 = vmatpush3.bf16.msra.mxu0 %v1135_v19  ;;  %v1552_v19 = vld [vmem:[%s2880_s8 + $0x8] sm:$0xff] }
 0x676   : > { %v979_v13 = vadd.f32 %v2033_v11, %v929_v38  ;;  %2117 = vmatprep.subr.bf16.mxu0 %v2588_v0  ;;  %v1230_v38 = vld [vmem:[%s2873_s1] sm:$0xff]  ;;  %v1555_v20 = vpack.c.bf16 %v1552_v19, %v1551_v18  ;;  %s1747_s1 = scalar_lea.sflag [#allocation4], %s2850_s23 }
 0x677   : > { %v1234_v41 = vpack.c.bf16 %v1231_v40, %v1230_v38 }
 0x678   : > { %2113 = vmatmul.mubr.msk.f32.vlgmr.msra.gmra.mxu1 %vm831_vm3, %v979_v13 }
 0x679   : > { %2124 = vmatpush3.bf16.msra.mxu1 %v1185_v12  ;;  %2127 = vmatprep.mubr.msk.bf16.mxu1 %vm2589_vm0, %v2588_v0 }
 0x67a   : > { %2125 = vmatprep.subr.bf16.mxu1 %v2588_v0  ;;  %2118 = vmatpush3.bf16.msra.mxu0 %v1134_v22 }
 0x67b   : > { %2131 = vmatprep.subr.bf16.mxu0 %v2588_v0 }
 0x67d   : > { %2126 = vmatpush3.bf16.msra.mxu1 %v1184_v16  ;;  %v1553_v16 = vld [vmem:[%s2880_s8 + $0x10] sm:$0xff] }
 0x67e   : > { %2139 = vmatprep.subr.mxu1 %v2588_v0 }
 0x680   : > { %2128 = vmatmul.mubr.msk.bf16.vlgmr.msra.gmra.mxu1 %vm632_vm1, %v1128_v8 }
 0x681   : > { %2141 = vmatprep.mubr.msk.f32.mxu1 %vm2589_vm0, %v2588_v0 }
 0x734   : > { %v1049_v1 = vpop.f32.mrf.mxu0 }
 0x735   : > { %v2988_v24 = vmul.f32 0.33333334, %v1049_v1 }
 0x736   : > { %v2109_v2 = vpop.f32.mrf.mxu0 }
 0x738   : > { %v1122_v23 = vpop.f32.mrf.mxu1 }
 0x739   : > { %v2990_v25 = vmul.f32 0.33333334, %v1122_v23 }
 0x73a   : > { %v2114_v26 = vpop.f32.mrf.mxu1 }
 0x73b   : > { %v1129_v27 = vpack.c.bf16 %v2990_v25, %v2988_v24 }
 0x73d   : > { %2120 = vmatmul.mubr.msk.bf16.vlgmr.msra.gmra.mxu0 %vm632_vm1, %v1129_v27 }
 0x73e   : > { %2135 = vmatprep.mubr.msk.bf16.mxu0 %vm2589_vm0, %v2588_v0  ;;  %2132 = vmatpush3.bf16.msra.mxu0 %v1235_v39 }
 0x73f   : > { %2133 = vmatprep.subr.bf16.mxu0 %v2588_v0 }
 0x740   : > { %v1223_v28 = vpop.f32.mrf.mxu1 }
 0x741   : > { %2140 = vmatpush3.xpose.msk.msra.mxu1 %vm632_vm1, %v1223_v28 }
 0x742   : > { %v2129_v29 = vpop.f32.mrf.mxu1  ;;  %2144 = vmatprep.subr.mxu1 %v2588_v0  ;;  %2134 = vmatpush3.bf16.msra.mxu0 %v1234_v41 }
 0x743   : > { %2149 = vmatprep.subr.bf16.mxu0 %v2588_v0 }
 0x744   : > { %v1226_v30 = vpop.f32.mrf.mxu1 }
 0x745   : > { %2136 = vmatmul.mubr.msk.bf16.vlgmr.msra.gmra.mxu0 %vm632_vm1, %v1128_v8  ;;  %v1554_v8 = vld [vmem:[%s2880_s8 + $0x18] sm:$0xff]  ;;  %s2485_s8 = scalar_lea.vmem %s1762_s18, 32 }
 0x746   : > { %v2130_v31 = vpop.f32.mrf.mxu1  ;;  %2151 = vmatprep.mubr.msk.bf16.mxu0 %vm2589_vm0, %v2588_v0  ;;  %v1556_v17 = vpack.c.bf16 %v1554_v8, %v1553_v16  ;;  %p2486_p13 = scmp.ne.s32.totalorder %s1762_s18, %s2485_s8 }
 0x747   : > { %v1607_v31 = vld [vmem:[%s2883_s6 + $0x18] sm:$0xff] }
 0x748   : > { %p2487_p0 = pnand %p2486_p13, %p2692_p9 }
 0x74a   : > { %p2488_p1 = pneg %p2487_p0 }
 0x7fd   : > { %v1173_v32 = vpop.f32.mrf.mxu0 }
 0x7fe   : > { %2142 = vmatmul.mubr.msk.f32.vlgmr.msra.gmra.mxu1 %vm632_vm1, %v1173_v32 }
 0x7ff   : > { %2145 = vmatpush3.xpose.msk.msra.mxu1 %vm632_vm1, %v1226_v30  ;;  %v2121_v33 = vpop.f32.mrf.mxu0  ;;  %2146 = vmatprep.mubr.msk.f32.mxu1 %vm2589_vm0, %v2588_v0  ;;  %v1606_v30 = vld [vmem:[%s2883_s6 + $0x10] sm:$0xff] }
 0x800   : > { %2155 = vmatprep.subr.bf16.mxu1 %v2588_v0  ;;  %v1609_v32 = vpack.c.bf16 %v1607_v31, %v1606_v30  ;;  %v1604_v33 = vld [vmem:[%s2883_s6] sm:$0xff] }
 0x801   : > { %v1176_v34 = vpop.f32.mrf.mxu0 }
 0x802   : > { %2147 = vmatmul.mubr.msk.f32.vlgmr.msra.gmra.mxu1 %vm632_vm1, %v1176_v34  ;;  %v1605_v34 = vld [vmem:[%s2883_s6 + $0x8] sm:$0xff]  ;;  %s2489_s6 = sshll.u32 %s2590_s3, 4  ;;  %s2490_s6 = int_to_ptr.vmem [resolvable:$false] %s2489_s6 }
 0x803   : > { %v2122_v35 = vpop.f32.mrf.mxu0  ;;  %2157 = vmatprep.mubr.msk.bf16.mxu1 %vm2589_vm0, %v2588_v0  ;;  %s2491_s20 = scalar_lea.vmem %s2490_s6, 64  ;;  %p2492_p4 = scmp.lt.s32.totalorder %s1762_s18, %s2490_s6 }
 0x804   : > { %v1608_v35 = vpack.c.bf16 %v1605_v34, %v1604_v33  ;;  %p2493_p5 = scmp.lt.s32.totalorder %s2491_s20, %s2485_s8 }
 0x805   : > { %v1270_v60 = vpop.f32.mrf.mxu0 }
 0x806   : > { %v1455_v61 = vpack.c.bf16 %v1270_v60, %v1270_v60  ;;  %p2494_p6 = por %p2493_p5, %p2492_p4 }
 0x807   : > { %v2137_v62 = vpop.f32.mrf.mxu0 }
 0x808   : > { %v1462_v63 = vsel %vm1460_vm9, %v1455_v61, 0  ;;  %p2495_p7 = pnand %p2494_p6, %p2488_p1 }
 0x809   : > { %v1273_v3 = vpop.f32.mrf.mxu0  ;;  %2150 = vmatpush3.bf16.msra.mxu0 %v1462_v63 }
 0x80a   : > { %v1456_v4 = vpack.c.bf16 %v1273_v3, %v1273_v3  ;;  %2161 = vmatprep.subr.bf16.mxu0 %v2588_v0 }
 0x80b   : > { %v2138_v5 = vpop.f32.mrf.mxu0 }
 0x80c   : > { %v1508_v6 = vsel %vm1460_vm9, %v1456_v4, 0 }
 0x80d   : > { %2156 = vmatpush3.bf16.msra.mxu1 %v1508_v6 }
 0x80e   : > { %2169 = vmatprep.subr.bf16.mxu1 %v2588_v0 }
 0x8be   : > { %v1349_v42 = vpop.f32.mrf.mxu1 }
 0x8bf   : > { %v1429_v43 = vmul.f32 0.17677669, %v1349_v42 }
 0x8c0   : > { %v2143_v44 = vpop.f32.mrf.mxu1 }
 0x8c1   : > { %v1431_v45 = vsel %vm831_vm3, %v1429_v43, -inf  ;;  %v1667_v44 = vld [vmem:[%s551_s5 + $0x18] sm:$0xff] }
 0x8c2   : > { %1432 = vmax.xlane.f32.xlu0 %v1431_v45  ;;  %v1425_v46 = vpop.f32.mrf.mxu1 }
 0x8c3   : > { %v1430_v47 = vmul.f32 0.17677669, %v1425_v46  ;;  %v1664_v46 = vld [vmem:[%s551_s5] sm:$0xff] }
 0x8c4   : > { %v2148_v48 = vpop.f32.mrf.mxu1 }
 0x8c5   : > { %v1434_v49 = vsel %vm831_vm3, %v1430_v47, -inf }
 0x8c6   : > { %1435 = vmax.xlane.f32.xlu1 %v1434_v49 }
 0x94b   : > { %v1433_v50 = vpop.xlane.xlu0 %1432 }
 0x94c   : > { %v1437_v51 = vsub.f32 %v1429_v43, %v1433_v50  ;;  %v1666_v43 = vld [vmem:[%s551_s5 + $0x10] sm:$0xff] }
 0x94d   : > { %v1669_v45 = vpack.c.bf16 %v1667_v44, %v1666_v43 }
 0x94e   : > { %v1439_v52 = vmul.f32 1.442695, %v1437_v51 }
 0x94f   : > { %v1436_v53 = vpop.xlane.xlu1 %1435 }
 0x950   : > { %2281 = vpow2.f32 %v1439_v52  ;;  %v1438_v54 = vsub.f32 %v1430_v47, %v1436_v53  ;;  %v1665_v47 = vld [vmem:[%s551_s5 + $0x8] sm:$0xff] }
 0x951   : > { %v1668_v48 = vpack.c.bf16 %v1665_v47, %v1664_v46 }
 0x952   : > { %v1441_v55 = vmul.f32 1.442695, %v1438_v54 }
 0x954   : > { %2283 = vpow2.f32 %v1441_v55 }
 0x95d   : > { %v2282_v56 = vpop.eup %2281 }
 0x95e   : > { %v1443_v57 = vsel %vm831_vm3, %v2282_v56, 0.0 }
 0x95f   : > { %1444 = vadd.xlane.f32.xlu0 %v1443_v57 }
 0x961   : > { %v2284_v58 = vpop.eup %2283 }
 0x962   : > { %v1446_v59 = vsel %vm831_vm3, %v2284_v58, 0.0 }
 0x963   : > { %1447 = vadd.xlane.f32.xlu1 %v1446_v59 }
 0x9e8   : > { %v1445_v7 = vpop.xlane.xlu0 %1444 }
 0x9e9   : > { %2285 = vrcp.f32 %v1445_v7 }
 0x9ec   : > { %v1448_v9 = vpop.xlane.xlu1 %1447 }
 0x9ed   : > { %2287 = vrcp.f32 %v1448_v9 }
 0x9f6   : > { %v2286_v10 = vpop.eup %2285 }
 0x9f7   : > { %v1451_v11 = vmul.f32 %v2286_v10, %v2282_v56  ;;  %v2048_v56 = vld [vmem:[%s628_s25] ss:$0 sm:$0xff] }
 0x9f9   : > { %v1453_v12 = vpack.c.bf16 %v1451_v11, %v1451_v11 }
 0x9fa   : > { %v2288_v13 = vpop.eup %2287 }
 0x9fb   : > { %2152 = vmatmul.mubr.msk.bf16.vlgmr.msra.gmra.mxu0 %vm831_vm3, %v1453_v12  ;;  %v1452_v14 = vmul.f32 %v2288_v13, %v2284_v58 }
 0x9fc   : > { %2165 = vmatprep.mubr.msk.bf16.mxu0 %vm2589_vm0, %v2588_v0  ;;  %2162 = vmatpush3.bf16.msra.mxu0 %v1556_v17 }
 0x9fd   : > { %v1454_v15 = vpack.c.bf16 %v1452_v14, %v1452_v14  ;;  %2163 = vmatprep.subr.bf16.mxu0 %v2588_v0 }
 0x9ff   : > { %2158 = vmatmul.mubr.msk.bf16.vlgmr.msra.gmra.mxu1 %vm831_vm3, %v1454_v15 }
 0xa00   : > { %2173 = vmatprep.mubr.msk.bf16.mxu1 %vm2589_vm0, %v2588_v0  ;;  %2164 = vmatpush3.bf16.msra.mxu0 %v1555_v20 }
 0xa01   : > { %2177 = vmatprep.subr.bf16.mxu0 %v2588_v0  ;;  %2170 = vmatpush3.bf16.msra.mxu1 %v1609_v32 }
 0xa02   : > { %2171 = vmatprep.subr.bf16.mxu1 %v2588_v0 }
 0xa05   : > { %2172 = vmatpush3.bf16.msra.mxu1 %v1608_v35 }
 0xabb   : > { %v1498_v21 = vpop.f32.mrf.mxu0 }
 0xabd   : > { %v2153_v22 = vpop.f32.mrf.mxu0 }
 0xabf   : > { %v1501_v1 = vpop.f32.mrf.mxu0  ;;  %v1544_v2 = vpop.f32.mrf.mxu1 }
 0xac0   : > { %v1550_v23 = vpack.c.bf16 %v1544_v2, %v1498_v21 }
 0xac1   : > { %v2154_v26 = vpop.f32.mrf.mxu0  ;;  %v2159_v27 = vpop.f32.mrf.mxu1 }
 0xac2   : > { %2166 = vmatmul.mubr.msk.bf16.vlgmr.msra.gmra.mxu0 %vm632_vm1, %v1550_v23 }
 0xac3   : > { %v1547_v28 = vpop.f32.mrf.mxu1  ;;  %2181 = vmatprep.mubr.msk.bf16.mxu0 %vm2589_vm0, %v2588_v0  ;;  %2178 = vmatpush3.bf16.msra.mxu0 %v1669_v45  ;;  %vm799_vm0 = vcmask 1041409  }
 0xac4   : > { %2179 = vmatprep.subr.bf16.mxu0 %v2588_v0 }
 0xac5   : > { %v2160_v29 = vpop.f32.mrf.mxu1 }
 0xac7   : > { %2180 = vmatpush3.bf16.msra.mxu0 %v1668_v48 }
 0xb82   : > { %v1594_v36 = vpop.f32.mrf.mxu0 }
 0xb83   : > { %v1601_v39 = vadd.f32 %v1594_v36, %v2988_v24  ;;  %v2046_v24 = vld [vmem:[%s625_s24] ss:$0 sm:$0xff] }
 0xb84   : > { %v2167_v37 = vpop.f32.mrf.mxu0 }
 0xb86   : > { %v1597_v38 = vpop.f32.mrf.mxu0 }
 0xb87   : > { %v1602_v40 = vadd.f32 %v1597_v38, %v2990_v25 }
 0xb88   : > { %v2168_v41 = vpop.f32.mrf.mxu0 }
 0xb89   : > { %v1603_v42 = vpack.c.bf16 %v1602_v40, %v1601_v39 }
 0xb8b   : > { %2174 = vmatmul.mubr.msk.bf16.vlgmr.msra.gmra.mxu1 %vm632_vm1, %v1603_v42 }
 0xc4b   : > { %v1654_v25 = vpop.f32.mrf.mxu1 }
 0xc4c   : > { %v1655_v50 = vadd.f32 %v2046_v24, %v1654_v25 }
 0xc4d   : > { %v2175_v49 = vpop.f32.mrf.mxu1 }
 0xc4e   : > { %v1661_v54 = vmax.f32 %v1655_v50, 0.0 }
 0xc4f   : > { %v1657_v51 = vpop.f32.mrf.mxu1 }
 0xc50   : > { %v1658_v52 = vadd.f32 %v2046_v24, %v1657_v51 }
 0xc51   : > { %v2176_v53 = vpop.f32.mrf.mxu1 }
 0xc52   : > { %v1662_v55 = vmax.f32 %v1658_v52, 0.0 }
 0xc54   : > { %v1663_v0 = vpack.c.bf16 %v1662_v55, %v1661_v54 }
 0xc56   : > { %2182 = vmatmul.mubr.msk.bf16.vlgmr.msra.gmra.mxu0 %vm632_vm1, %v1663_v0 }
 0xd16   : > { %v1714_v57 = vpop.f32.mrf.mxu0 }
 0xd17   : > { %v1715_v58 = vadd.f32 %v2048_v56, %v1714_v57 }
 0xd18   : > { %v2183_v59 = vpop.f32.mrf.mxu0 }
 0xd19   : > { %v1721_v60 = vadd.f32 %v1715_v58, %v1601_v39 }
 0xd1a   : > { %v1717_v61 = vpop.f32.mrf.mxu0 }
 0xd1b   : > { %v1723_v62 = vsel %vm632_vm1, %v1721_v60, 0.0  ;;  %v1718_v63 = vadd.f32 %v2048_v56, %v1717_v61 }
 0xd1c   : > { %v1724_v3 = vrot.slane %v1723_v62, 4  ;;  %v2184_v4 = vpop.f32.mrf.mxu0 }
 0xd1d   : > { %v1722_v5 = vadd.f32 %v1718_v63, %v1602_v40 }
 0xd1e   : > { %v1725_v6 = vadd.f32 %v1724_v3, %v1723_v62 }
 0xd1f   : > { %v1730_v7 = vsel %vm632_vm1, %v1722_v5, 0.0  ;;  %vm1744_vm1 = vcmask 254976  }
 0xd20   : > { %v1726_v9 = vrot.slane %v1725_v6, 2  ;;  %v1731_v10 = vrot.slane %v1730_v7, 4 }
 0xd22   : > { %v1727_v11 = vadd.f32 %v1726_v9, %v1725_v6  ;;  %v1732_v12 = vadd.f32 %v1731_v10, %v1730_v7 }
 0xd24   : > { %v1728_v13 = vrot.slane %v1727_v11, 1  ;;  %v1733_v14 = vrot.slane %v1732_v12, 2 }
 0xd26   : > { %v1734_v15 = vadd.f32 %v1733_v14, %v1732_v12  ;;  %v1729_v16 = vadd.f32 %v1728_v13, %v1727_v11 }
 0xd28   : > { %v1735_v8 = vrot.slane %v1734_v15, 1  ;;  %v1738_v18 = vmul.f32 0.125, %v1729_v16 }
 0xd2a   : > { %v1736_v17 = vadd.f32 %v1735_v8, %v1734_v15 }
 0xd2c   : > { %v1739_v19 = vmul.f32 0.125, %v1736_v17 }
 0xd2e   : > { %v1742_v20 = vsel %vm799_vm0, %v1739_v19, %v1738_v18 }
 0xd2f   : > { %1745 = vst.msk [vmem:[%s621_s28] sm:$0x3] %vm1744_vm1, %v1742_v20 }
 0xd30   : > { %2498 = shalt.err (!%p2495_p7)
}
 0xd31   : > { %s2499_s5 = scalar_lea.hbm %s3063_s17, 32  ;;  %s2503_s30 = scalar_lea.hbm %s3160_s21, 96 }
 0xd32   : > { %p2500_p10 = scmp.ne.s32.totalorder %s3063_s17, %s2499_s5  ;;  %p2504_p3 = scmp.lt.s32.totalorder %s3063_s17, %s3160_s21 }
 0xd33   : > { %p2505_p8 = scmp.lt.s32.totalorder %s2503_s30, %s2499_s5 }
 0xd34   : > { %p2501_p12 = pnand %p2500_p10, %p2692_p9 }
 0xd35   : > { %p2506_p13 = por %p2505_p8, %p2504_p3 }
 0xd36   : > { %p2502_p2 = pneg %p2501_p12 }
 0xd38   : > { %p2507_p0 = pnand %p2506_p13, %p2502_p2 }
 0xd3a   : > { %2510 = shalt.err (!%p2507_p0)
}
 0xd3b   : > { %2199 = dma.vmem_to_hbm [thread:$0]  (%p2692_p9), %s1762_s18, 32, %s3063_s17, %s1747_s1  }
 0xd3c PF: > { %s3161_s24 = sld [smem:[#allocation23_spill]] }
 0xd3d   : > { %s3162_s27 = sld [smem:[#allocation20_spill]] }
 0xd42   : > { %p2228_p1 = scmp.ge.s32.totalorder %s3161_s24, 2 }
 0xd43   : > { %s1773_s11 = sand.u32 1, %s3162_s27  }
 0xd44   : > { %p2224_p4 = pnand %p2228_p1, %p2699_p11  ;;  %s1774_s25 = scalar_lea.sflag [#allocation4], %s1773_s11 }
 0xd46   : > { %p2225_p5 = pneg %p2224_p4 }
 0xd48   : > { %2552 = dma.done.wait (%p2225_p5), %s1774_s25, 32  }
 0xd49   : > { %2554 = vsyncadd (%p2225_p5), %s1774_s25, 4294967264  ;;  %s34_s14 = sadd.s32 1, %s3161_s24   ;;  %s3164_s26 = sld [smem:[#allocation21_spill]] }
 0xd4a   : > { %p31_p6 = scmp.ge.s32.totalorder %s34_s14, 5   ;;  %s3165_s11 = sld [smem:[#allocation27_spill]] }
 0xd4b   : > { %s3166_s15 = sld [smem:[#allocation25_spill]]  ;;  %s3167_s30 = smov %s2561_s10 }
 0xd4c   : > { %s3169_s12 = smov %s2573_s13 }
 0xd4d   :  { %33 = sbr.rel (!%p31_p6) target bundleno = 19 (0x13), region = 179 }
 0xd4f   : > { %s3168_s10 = smov %s3164_s26 }
 0xd51   : > { %s3170_s13 = smov %s3166_s15 }
 0xd52   :  { %1779 = vsyncpa [#allocation3], 1 }
 0xd53   :  { %1781 = vsyncpa [#allocation3 + $0x1], 1 }
 0xd54   :  { %1782 = vsyncpa [#allocation6], 1 }
 0xd55   :  { %1784 = vsyncpa [#allocation6 + $0x1], 1 }
 0xd56   :  { %1785 = vsyncpa [#allocation9], 1 }
 0xd57   :  { %1787 = vsyncpa [#allocation9 + $0x1], 1 }
 0xd58   :  { %1788 = vsyncpa [#allocation12], 1 }
 0xd59   :  { %1790 = vsyncpa [#allocation12 + $0x1], 1 }
 0xd5a   :  { %1791 = vsyncpa [#allocation4], 1 }
 0xd5b   :  { %1793 = vsyncpa [#allocation4 + $0x1], 1 }

</bundles_post_ra>
